<compile_context>
chip_gen: v7x
topology: tpu7x:2x2x1
jax: 0.10.0
libtpu: 0.0.40
codegen_flags: <defaults>
</compile_context>

<pallas_src>
import functools

import jax
import jax.numpy as jnp
from jax import lax
from jax.experimental import pallas as pl
from jax.experimental.pallas import tpu as pltpu

EPS = 1e-5


def fused_kernel(x_ref, res_ref, w1_ref, scale_ref, w2_ref, gamma_ref, beta_ref,
                 out_ref, *, inv_p):
    # x_ref:     (C_mid, P)     x152 as (channels, pixels)
    # res_ref:   (C_out, P)     x146
    # w1_ref:    (C_out, C_mid) conv2d54 weight (1x1 squeezed, native (out,in))
    # scale_ref: (1, C_mid)     x157 per-input-channel scale
    # w2_ref:    (C_mid, C_out) conv2d55 weight (native (out,in))
    # gamma/beta:(C_out, 1)     BN affine params
    # out_ref:   (C_mid, P)

    # Fold channel-wise scale into conv1 weight: (x*s) @ W1^T == x @ (W1*s)^T.
    w1s = w1_ref[...] * scale_ref[...]                       # (C_out, C_mid)

    # 1x1 conv #1 == MXU matmul: (C_out, C_mid) @ (C_mid, P) -> (C_out, P)
    z = jnp.dot(w1s, x_ref[...], preferred_element_type=jnp.float32)

    # BatchNorm2d training-mode forward: biased batch stats over the P axis.
    # One reduction pass over z (sum + sum-of-squares), then fold the BN
    # affine into a single per-channel scale/shift.
    s1 = jnp.sum(z, axis=1, keepdims=True)                   # (C_out, 1)
    s2 = jnp.sum(z * z, axis=1, keepdims=True)               # (C_out, 1)
    mean = s1 * inv_p
    var = s2 * inv_p - mean * mean
    a = gamma_ref[...] * lax.rsqrt(var + EPS)                # (C_out, 1)
    b = beta_ref[...] - mean * a                             # (C_out, 1)

    # BN affine + residual fused: y = z*a + (b + res)
    y = z * a + (b + res_ref[...])                           # (C_out, P)

    # 1x1 conv #2 == MXU matmul: (C_mid, C_out) @ (C_out, P) -> (C_mid, P)
    out_ref[...] = jnp.dot(w2_ref[...], y, preferred_element_type=jnp.float32)


def module_forward(x152, x157, x146, w1, w2, gamma, beta):
    """x152: (N, 672, H, W), x157: (1, 672, 1, 1), x146: (N, 112, H, W).
    w1: (112, 672, 1, 1), w2: (672, 112, 1, 1). Returns (N, 672, H, W)."""
    N, C_mid, H, W = x152.shape
    C_out = x146.shape[1]
    P = N * H * W

    # NCHW -> (C, P). The size-1-axis transposes are no-ops at N=1 (XLA folds
    # them), so no extra HBM passes are paid around the kernel.
    x = jnp.transpose(x152, (1, 0, 2, 3)).reshape(C_mid, P)
    res = jnp.transpose(x146, (1, 0, 2, 3)).reshape(C_out, P)
    scale = x157.reshape(1, C_mid)
    w1m = w1.reshape(C_out, C_mid)     # used on the left: (C_out,C_mid)@(C_mid,P)
    w2m = w2.reshape(C_mid, C_out)     # used on the left: (C_mid,C_out)@(C_out,P)
    gamma2 = gamma.reshape(C_out, 1)
    beta2 = beta.reshape(C_out, 1)

    kernel = functools.partial(fused_kernel, inv_p=1.0 / P)

    # Everything fits comfortably in VMEM at these sizes -> single grid point,
    # full-array blocks. (If P grows, tile the P/lane axis with a grid and a
    # two-pass BN; not needed at P=196.)
    out = pl.pallas_call(
        kernel,
        out_shape=jax.ShapeDtypeStruct((C_mid, P), jnp.float32),
        in_specs=[
            pl.BlockSpec((C_mid, P), lambda: (0, 0)),
            pl.BlockSpec((C_out, P), lambda: (0, 0)),
            pl.BlockSpec((C_out, C_mid), lambda: (0, 0)),
            pl.BlockSpec((1, C_mid), lambda: (0, 0)),
            pl.BlockSpec((C_mid, C_out), lambda: (0, 0)),
            pl.BlockSpec((C_out, 1), lambda: (0, 0)),
            pl.BlockSpec((C_out, 1), lambda: (0, 0)),
        ],
        out_specs=pl.BlockSpec((C_mid, P), lambda: (0, 0)),
        compiler_params=pltpu.CompilerParams(vmem_limit_bytes=16 << 20),
    )(x, res, w1m, scale, w2m, gamma2, beta2)

    # (C, P) -> NCHW; again free at N=1.
    return jnp.transpose(out.reshape(C_mid, N, H, W), (1, 0, 2, 3))


def reference(x152, x157, x146, w1, w2, gamma, beta):
    """Pure-JAX NCHW reference mirroring the PyTorch module."""
    x158 = x152 * x157
    x159 = lax.conv_general_dilated(
        x158, w1, (1, 1), "VALID",
        dimension_numbers=("NCHW", "OIHW", "NCHW"))
    mean = jnp.mean(x159, axis=(0, 2, 3), keepdims=True)
    var = jnp.mean((x159 - mean) ** 2, axis=(0, 2, 3), keepdims=True)
    x160 = ((x159 - mean) / jnp.sqrt(var + EPS)
            * gamma.reshape(1, -1, 1, 1) + beta.reshape(1, -1, 1, 1))
    x161 = x160 + x146
    x162 = lax.conv_general_dilated(
        x161, w2, (1, 1), "VALID",
        dimension_numbers=("NCHW", "OIHW", "NCHW"))
    return x162


if __name__ == "__main__":
    key = jax.random.PRNGKey(0)
    k1, k2, k3, k4, k5, k6, k7 = jax.random.split(key, 7)

    N, C_mid, C_out, H, W = 1, 672, 112, 14, 14

    # inputs (shapes from the original module)
    x152 = jax.random.normal(k1, (N, C_mid, H, W), jnp.float32)
    x157 = jax.random.normal(k2, (1, C_mid, 1, 1), jnp.float32)
    x146 = jax.random.normal(k3, (N, C_out, H, W), jnp.float32)

    # deterministic parameter init (synthetic; shapes from __init__)
    w1 = 0.05 * jax.random.normal(k4, (C_out, C_mid, 1, 1), jnp.float32)  # conv2d54
    w2 = 0.05 * jax.random.normal(k5, (C_mid, C_out, 1, 1), jnp.float32)  # conv2d55
    gamma = 1.0 + 0.1 * jax.random.normal(k6, (C_out,), jnp.float32)      # BN weight
    beta = 0.1 * jax.random.normal(k7, (C_out,), jnp.float32)             # BN bias

    out = jax.block_until_ready(
        module_forward(x152, x157, x146, w1, w2, gamma, beta))
    ref = jax.block_until_ready(
        reference(x152, x157, x146, w1, w2, gamma, beta))

    assert out.shape == (N, C_mid, H, W), out.shape
    assert jnp.allclose(out, ref, rtol=1e-3, atol=1e-3), \
        float(jnp.max(jnp.abs(out - ref)))

    print("KERNEL_OK")
</pallas_src>

<mosaic_0001>
module attributes {stable_mosaic.version = 11 : i64} {
  func.func @fused_kernel(%arg0: memref<672x196xf32, #tpu.memory_space<vmem>>, %arg1: memref<112x196xf32, #tpu.memory_space<vmem>>, %arg2: memref<112x672xf32, #tpu.memory_space<vmem>>, %arg3: memref<1x672xf32, #tpu.memory_space<vmem>>, %arg4: memref<672x112xf32, #tpu.memory_space<vmem>>, %arg5: memref<112x1xf32, #tpu.memory_space<vmem>>, %arg6: memref<112x1xf32, #tpu.memory_space<vmem>>, %arg7: memref<672x196xf32, #tpu.memory_space<vmem>>) attributes {dimension_semantics = [], scalar_prefetch = 0 : i64, scratch_operands = 0 : i64, tpu.core_type = #tpu.core_type<tc>} {
    %c0 = arith.constant 0 : index
    %c0_0 = arith.constant 0 : index
    %0 = vector.load %arg2[%c0, %c0_0] : memref<112x672xf32, #tpu.memory_space<vmem>>, vector<112x672xf32>
    %c0_1 = arith.constant 0 : index
    %c0_2 = arith.constant 0 : index
    %1 = vector.load %arg3[%c0_1, %c0_2] : memref<1x672xf32, #tpu.memory_space<vmem>>, vector<1x672xf32>
    %2 = vector.broadcast %1 : vector<1x672xf32> to vector<112x672xf32>
    %3 = arith.mulf %0, %2 : vector<112x672xf32>
    %c0_3 = arith.constant 0 : index
    %c0_4 = arith.constant 0 : index
    %4 = vector.load %arg0[%c0_3, %c0_4] : memref<672x196xf32, #tpu.memory_space<vmem>>, vector<672x196xf32>
    %cst = arith.constant dense<0.000000e+00> : vector<112x196xf32>
    %5 = tpu.matmul %3, %4, %cst {dimension_numbers = #tpu.dot_dimension_numbers<[1], [0], [0], [1], [0, 0, 1, 1], [], []>} : vector<112x672xf32>, vector<672x196xf32>, vector<112x196xf32> -> vector<112x196xf32>
    %cst_5 = arith.constant dense<0.000000e+00> : vector<112xf32>
    %6 = vector.multi_reduction <add>, %5, %cst_5 [1] : vector<112x196xf32> to vector<112xf32>
    %7 = vector.shape_cast %6 : vector<112xf32> to vector<112x1xf32>
    %8 = arith.mulf %5, %5 : vector<112x196xf32>
    %cst_6 = arith.constant dense<0.000000e+00> : vector<112xf32>
    %9 = vector.multi_reduction <add>, %8, %cst_6 [1] : vector<112x196xf32> to vector<112xf32>
    %10 = vector.shape_cast %9 : vector<112xf32> to vector<112x1xf32>
    %cst_7 = arith.constant 0.00510204071 : f32
    %11 = vector.broadcast %cst_7 : f32 to vector<112x1xf32>
    %12 = arith.mulf %7, %11 : vector<112x1xf32>
    %cst_8 = arith.constant 0.00510204071 : f32
    %13 = vector.broadcast %cst_8 : f32 to vector<112x1xf32>
    %14 = arith.mulf %10, %13 : vector<112x1xf32>
    %15 = arith.mulf %12, %12 : vector<112x1xf32>
    %16 = arith.subf %14, %15 : vector<112x1xf32>
    %c0_9 = arith.constant 0 : index
    %c0_10 = arith.constant 0 : index
    %17 = vector.load %arg5[%c0_9, %c0_10] : memref<112x1xf32, #tpu.memory_space<vmem>>, vector<112x1xf32>
    %cst_11 = arith.constant 9.99999974E-6 : f32
    %18 = vector.broadcast %cst_11 : f32 to vector<112x1xf32>
    %19 = arith.addf %16, %18 : vector<112x1xf32>
    %20 = math.rsqrt %19 : vector<112x1xf32>
    %21 = arith.mulf %17, %20 : vector<112x1xf32>
    %c0_12 = arith.constant 0 : index
    %c0_13 = arith.constant 0 : index
    %22 = vector.load %arg6[%c0_12, %c0_13] : memref<112x1xf32, #tpu.memory_space<vmem>>, vector<112x1xf32>
    %23 = arith.mulf %12, %21 : vector<112x1xf32>
    %24 = arith.subf %22, %23 : vector<112x1xf32>
    %25 = vector.broadcast %21 : vector<112x1xf32> to vector<112x196xf32>
    %26 = arith.mulf %5, %25 : vector<112x196xf32>
    %c0_14 = arith.constant 0 : index
    %c0_15 = arith.constant 0 : index
    %27 = vector.load %arg1[%c0_14, %c0_15] : memref<112x196xf32, #tpu.memory_space<vmem>>, vector<112x196xf32>
    %28 = vector.broadcast %24 : vector<112x1xf32> to vector<112x196xf32>
    %29 = arith.addf %28, %27 : vector<112x196xf32>
    %30 = arith.addf %26, %29 : vector<112x196xf32>
    %c0_16 = arith.constant 0 : index
    %c0_17 = arith.constant 0 : index
    %31 = vector.load %arg4[%c0_16, %c0_17] : memref<672x112xf32, #tpu.memory_space<vmem>>, vector<672x112xf32>
    %cst_18 = arith.constant dense<0.000000e+00> : vector<672x196xf32>
    %32 = tpu.matmul %31, %30, %cst_18 {dimension_numbers = #tpu.dot_dimension_numbers<[1], [0], [0], [1], [0, 0, 1, 1], [], []>} : vector<672x112xf32>, vector<112x196xf32>, vector<672x196xf32> -> vector<672x196xf32>
    %c0_19 = arith.constant 0 : index
    %c0_20 = arith.constant 0 : index
    %33 = vector.load %arg7[%c0_19, %c0_20] : memref<672x196xf32, #tpu.memory_space<vmem>>, vector<672x196xf32>
    tpu.vector_store %arg7[%c0_19, %c0_20], %32 {strides = array<i32>} : memref<672x196xf32, #tpu.memory_space<vmem>>, vector<672x196xf32>,
    return
  }
}

</mosaic_0001>

<bundles_post_ra>
// kernel: tpu_custom_call.1
= control target key start
LH: loop header
LB: loop body
LE: loop exit
PB: predicated region body
PF: predicated region fallthrough
CT: control target
= control target key end

     0   :  { %v112_v25 = vlaneseq  ;;  %vm394_vm0 = vcmask 261120   ;;  %vm884_vm1 = vcmask 556032   ;;  %vm1515_vm2 = vcmask 916480   ;;  %s5259_s0 = inlined_call_operand.vmem [shape: f32[672,196], index: 0, kind: input, shape index: {}]   ;;  %s5260_s2 = inlined_call_operand.vmem [shape: f32[112,672], index: 2, kind: input, shape index: {}]   ;;  %s5261_s3 = inlined_call_operand.vmem [shape: f32[1,672], index: 3, kind: input, shape index: {}]   ;;  %s5262_s5 = inlined_call_operand.vmem [shape: f32[112,1], index: 5, kind: input, shape index: {}]   ;;  %s5263_s6 = inlined_call_operand.vmem [shape: f32[112,1], index: 6, kind: input, shape index: {}]   ;;  %s5264_s1 = inlined_call_operand.vmem [shape: f32[112,196], index: 1, kind: input, shape index: {}]   ;;  %s5265_s4 = inlined_call_operand.vmem [shape: f32[672,112], index: 4, kind: input, shape index: {}]   ;;  %s5266_s7 = inlined_call_operand.vmem [shape: f32[672,196], index: 7, kind: output, shape index: {}]  }
   0x1   :  { %v227_v0 = vld [vmem:[%s5259_s0 + $0x8] sm:$0xff]  ;;  %v229_v1 = vld [vmem:[%s5259_s0 + $0x18] sm:$0xff]  ;;  %v226_v2 = vld [vmem:[%s5259_s0] sm:$0xff] }
   0x2   :  { %v2607_v3 = vpack.c.bf16 %v229_v1, %v227_v0  ;;  %v228_v4 = vld [vmem:[%s5259_s0 + $0x10] sm:$0xff]  ;;  %v231_v5 = vld [vmem:[%s5259_s0 + $0x28] sm:$0xff]  ;;  %v233_v6 = vld [vmem:[%s5259_s0 + $0x38] sm:$0xff]  ;;  %v3013_v32 = vshrl.u32 %v112_v25, 7 }
   0x3   :  { %v2609_v7 = vpack.c.bf16 %v228_v4, %v226_v2  ;;  %v2611_v8 = vpack.c.bf16 %v233_v6, %v231_v5  ;;  %v230_v9 = vld [vmem:[%s5259_s0 + $0x20] sm:$0xff]  ;;  %v232_v10 = vld [vmem:[%s5259_s0 + $0x30] sm:$0xff]  ;;  %v235_v11 = vld [vmem:[%s5259_s0 + $0x48] sm:$0xff] }
   0x4   :  { %2608 = vmatprep.subr.bf16.mxu0 %v2607_v3  ;;  %v237_v12 = vld [vmem:[%s5259_s0 + $0x58] sm:$0xff]  ;;  %v2613_v13 = vpack.c.bf16 %v232_v10, %v230_v9  ;;  %v234_v15 = vld [vmem:[%s5259_s0 + $0x40] sm:$0xff]  ;;  %v236_v16 = vld [vmem:[%s5259_s0 + $0x50] sm:$0xff]  ;;  %v118_v39 = vsub.s32 1, %v3013_v32  ;;  %v126_v40 = vsub.s32 3, %v3013_v32  ;;  %v122_v41 = vsub.s32 2, %v3013_v32 }
   0x5   :  { %2610 = vmatpush1.bf16.msra.mxu0 %v2609_v7  ;;  %v2615_v14 = vpack.c.bf16 %v237_v12, %v235_v11  ;;  %v239_v17 = vld [vmem:[%s5259_s0 + $0x68] sm:$0xff]  ;;  %v241_v18 = vld [vmem:[%s5259_s0 + $0x78] sm:$0xff]  ;;  %v2617_v19 = vpack.c.bf16 %v236_v16, %v234_v15  ;;  %v238_v21 = vld [vmem:[%s5259_s0 + $0x60] sm:$0xff] }
   0x6   :  { %2612 = vmatprep.subr.bf16.mxu0 %v2611_v8  ;;  %v2619_v20 = vpack.c.bf16 %v241_v18, %v239_v17  ;;  %v240_v22 = vld [vmem:[%s5259_s0 + $0x70] sm:$0xff]  ;;  %v243_v23 = vld [vmem:[%s5259_s0 + $0x88] sm:$0xff]  ;;  %v245_v24 = vld [vmem:[%s5259_s0 + $0x98] sm:$0xff] }
   0x7   :  { %v2621_v26 = vpack.c.bf16 %v240_v22, %v238_v21  ;;  %v2623_v27 = vpack.c.bf16 %v245_v24, %v243_v23  ;;  %v242_v28 = vld [vmem:[%s5259_s0 + $0x80] sm:$0xff]  ;;  %v244_v29 = vld [vmem:[%s5259_s0 + $0x90] sm:$0xff]  ;;  %v247_v30 = vld [vmem:[%s5259_s0 + $0xa8] sm:$0xff] }
   0x8   :  { %v249_v31 = vld [vmem:[%s5259_s0 + $0xb8] sm:$0xff]  ;;  %v2625_v33 = vpack.c.bf16 %v244_v29, %v242_v28  ;;  %v246_v35 = vld [vmem:[%s5259_s0 + $0xa0] sm:$0xff]  ;;  %v248_v36 = vld [vmem:[%s5259_s0 + $0xb0] sm:$0xff] }
   0x9   :  { %2614 = vmatpush1.bf16.msra.mxu0 %v2613_v13  ;;  %v2627_v34 = vpack.c.bf16 %v249_v31, %v247_v30  ;;  %v251_v37 = vld [vmem:[%s5259_s0 + $0xc8] sm:$0xff]  ;;  %v253_v38 = vld [vmem:[%s5259_s0 + $0xd8] sm:$0xff]  ;;  %v2629_v42 = vpack.c.bf16 %v248_v36, %v246_v35  ;;  %v250_v43 = vld [vmem:[%s5259_s0 + $0xc0] sm:$0xff] }
   0xa   :  { %2616 = vmatprep.subr.bf16.mxu0 %v2615_v14  ;;  %v2631_v44 = vpack.c.bf16 %v253_v38, %v251_v37  ;;  %v252_v45 = vld [vmem:[%s5259_s0 + $0xd0] sm:$0xff]  ;;  %v27_v46 = vld [vmem:[%s5260_s2 + $0x8] sm:$0xff]  ;;  %v3042_v47 = vld [vmem:[%s5261_s3] sm:$0x3f]  ;;  %v130_v38 = vsub.s32 4, %v3013_v32 }
   0xb   :  { %v255_v48 = vld [vmem:[%s5259_s0 + $0xe8] sm:$0xff]  ;;  %v257_v49 = vld [vmem:[%s5259_s0 + $0xf8] sm:$0xff]  ;;  %v3051_v50 = vrot.slane %v3042_v47, %v118_v39  ;;  %v3054_v51 = vrot.slane %v3042_v47, %v126_v40  ;;  %v3057_v52 = vrot.slane %v3042_v47, %v122_v41  ;;  %v2633_v53 = vpack.c.bf16 %v252_v45, %v250_v43  ;;  %v254_v56 = vld [vmem:[%s5259_s0 + $0xe0] sm:$0xff] }
   0xc   :  { %v2635_v55 = vpack.c.bf16 %v257_v49, %v255_v48  ;;  %v256_v57 = vld [vmem:[%s5259_s0 + $0xf0] sm:$0xff]  ;;  %v259_v58 = vld [vmem:[%s5259_s0 + $0x108] sm:$0xff]  ;;  %v261_v59 = vld [vmem:[%s5259_s0 + $0x118] sm:$0xff] }
   0xd   :  { %2618 = vmatpush1.bf16.msra.mxu0 %v2617_v19  ;;  %v143_v54 = vmul.f32 %v3051_v50, %v27_v46  ;;  %v2637_v60 = vpack.c.bf16 %v256_v57, %v254_v56  ;;  %v2639_v61 = vpack.c.bf16 %v261_v59, %v259_v58  ;;  %v258_v62 = vld [vmem:[%s5259_s0 + $0x100] sm:$0xff]  ;;  %v260_v63 = vld [vmem:[%s5259_s0 + $0x110] sm:$0xff]  ;;  %v263_v0 = vld [vmem:[%s5259_s0 + $0x128] sm:$0xff] }
   0xe   :  { %2620 = vmatprep.subr.bf16.mxu0 %v2619_v20  ;;  %v265_v1 = vld [vmem:[%s5259_s0 + $0x138] sm:$0xff]  ;;  %v2641_v2 = vpack.c.bf16 %v260_v63, %v258_v62  ;;  %v262_v4 = vld [vmem:[%s5259_s0 + $0x120] sm:$0xff]  ;;  %v264_v5 = vld [vmem:[%s5259_s0 + $0x130] sm:$0xff] }
   0xf   :  { %501 = vmatprep.mubr.f32.mxu0 %v143_v54  ;;  %v2643_v3 = vpack.c.bf16 %v265_v1, %v263_v0  ;;  %v267_v6 = vld [vmem:[%s5259_s0 + $0x148] sm:$0xff]  ;;  %v269_v7 = vld [vmem:[%s5259_s0 + $0x158] sm:$0xff]  ;;  %v2645_v8 = vpack.c.bf16 %v264_v5, %v262_v4  ;;  %v266_v10 = vld [vmem:[%s5259_s0 + $0x140] sm:$0xff] }
  0x10   :  { %v2647_v9 = vpack.c.bf16 %v269_v7, %v267_v6  ;;  %v268_v11 = vld [vmem:[%s5259_s0 + $0x150] sm:$0xff]  ;;  %v271_v12 = vld [vmem:[%s5259_s0 + $0x168] sm:$0xff]  ;;  %v273_v13 = vld [vmem:[%s5259_s0 + $0x178] sm:$0xff] }
  0x11   :  { %2622 = vmatpush1.bf16.msra.mxu0 %v2621_v26  ;;  %v2649_v14 = vpack.c.bf16 %v268_v11, %v266_v10  ;;  %v2651_v15 = vpack.c.bf16 %v273_v13, %v271_v12  ;;  %v270_v16 = vld [vmem:[%s5259_s0 + $0x160] sm:$0xff]  ;;  %v272_v17 = vld [vmem:[%s5259_s0 + $0x170] sm:$0xff]  ;;  %v275_v18 = vld [vmem:[%s5259_s0 + $0x188] sm:$0xff] }
  0x12   :  { %2624 = vmatprep.subr.bf16.mxu0 %v2623_v27  ;;  %v277_v19 = vld [vmem:[%s5259_s0 + $0x198] sm:$0xff]  ;;  %v2653_v20 = vpack.c.bf16 %v272_v17, %v270_v16  ;;  %v274_v22 = vld [vmem:[%s5259_s0 + $0x180] sm:$0xff]  ;;  %v276_v23 = vld [vmem:[%s5259_s0 + $0x190] sm:$0xff] }
  0x13   :  { %v2655_v21 = vpack.c.bf16 %v277_v19, %v275_v18  ;;  %v279_v24 = vld [vmem:[%s5259_s0 + $0x1a8] sm:$0xff]  ;;  %v281_v25 = vld [vmem:[%s5259_s0 + $0x1b8] sm:$0xff]  ;;  %v2657_v26 = vpack.c.bf16 %v276_v23, %v274_v22  ;;  %v278_v28 = vld [vmem:[%s5259_s0 + $0x1a0] sm:$0xff] }
  0x14   :  { %v2659_v27 = vpack.c.bf16 %v281_v25, %v279_v24  ;;  %v280_v29 = vld [vmem:[%s5259_s0 + $0x1b0] sm:$0xff]  ;;  %v283_v30 = vld [vmem:[%s5259_s0 + $0x1c8] sm:$0xff]  ;;  %v285_v31 = vld [vmem:[%s5259_s0 + $0x1d8] sm:$0xff] }
  0x15   :  { %2626 = vmatpush1.bf16.msra.mxu0 %v2625_v33  ;;  %v2661_v33 = vpack.c.bf16 %v280_v29, %v278_v28  ;;  %v2663_v35 = vpack.c.bf16 %v285_v31, %v283_v30  ;;  %v282_v36 = vld [vmem:[%s5259_s0 + $0x1c0] sm:$0xff]  ;;  %v284_v37 = vld [vmem:[%s5259_s0 + $0x1d0] sm:$0xff]  ;;  %v287_v39 = vld [vmem:[%s5259_s0 + $0x1e8] sm:$0xff] }
  0x16   :  { %2628 = vmatprep.subr.bf16.mxu0 %v2627_v34  ;;  %v134_v34 = vsub.s32 5, %v3013_v32  ;;  %v289_v40 = vld [vmem:[%s5259_s0 + $0x1f8] sm:$0xff]  ;;  %v2665_v43 = vpack.c.bf16 %v284_v37, %v282_v36  ;;  %v286_v46 = vld [vmem:[%s5259_s0 + $0x1e0] sm:$0xff]  ;;  %v288_v48 = vld [vmem:[%s5259_s0 + $0x1f0] sm:$0xff] }
  0x17   :  { %v2667_v45 = vpack.c.bf16 %v289_v40, %v287_v39  ;;  %v291_v49 = vld [vmem:[%s5259_s0 + $0x208] sm:$0xff]  ;;  %v2669_v54 = vpack.c.bf16 %v288_v48, %v286_v46  ;;  %v290_v57 = vld [vmem:[%s5259_s0 + $0x200] sm:$0xff]  ;;  %v292_v58 = vld [vmem:[%s5259_s0 + $0x210] sm:$0xff] }
  0x18   :  { %v3159_v41 = vrot.slane %v3042_v47, %v134_v34  ;;  %v295_v59 = vld [vmem:[%s5259_s0 + $0x228] sm:$0xff]  ;;  %v2673_v62 = vpack.c.bf16 %v292_v58, %v290_v57  ;;  %v32_v0 = vld [vmem:[%s5260_s2 + $0x30] sm:$0xff]  ;;  %v301_v6 = vld [vmem:[%s5259_s0 + $0x258] sm:$0xff] }
  0x19   :  { %2630 = vmatpush1.bf16.msra.mxu0 %v2629_v42  ;;  %v114_v42 = vsub.s32 0, %v3013_v32  ;;  %v293_v32 = vld [vmem:[%s5259_s0 + $0x218] sm:$0xff]  ;;  %v39_v4 = vld [vmem:[%s5260_s2 + $0x68] sm:$0xff]  ;;  %v38_v10 = vld [vmem:[%s5260_s2 + $0x60] sm:$0xff] }
  0x1a   :  { %2632 = vmatprep.subr.bf16.mxu0 %v2631_v44  ;;  %v3163_v44 = vrot.slane %v3042_v47, %v130_v38  ;;  %v2671_v56 = vpack.c.bf16 %v293_v32, %v291_v49  ;;  %v299_v5 = vld [vmem:[%s5259_s0 + $0x248] sm:$0xff]  ;;  %v298_v12 = vld [vmem:[%s5259_s0 + $0x240] sm:$0xff]  ;;  %v300_v13 = vld [vmem:[%s5259_s0 + $0x250] sm:$0xff] }
  0x1b   :  { %v2679_v11 = vpack.c.bf16 %v301_v6, %v299_v5  ;;  %v305_v16 = vld [vmem:[%s5259_s0 + $0x278] sm:$0xff]  ;;  %v2681_v18 = vpack.c.bf16 %v300_v13, %v298_v12  ;;  %v302_v22 = vld [vmem:[%s5259_s0 + $0x260] sm:$0xff]  ;;  %v304_v23 = vld [vmem:[%s5259_s0 + $0x270] sm:$0xff] }
  0x1c   :  { %v51_v24 = vld [vmem:[%s5260_s2 + $0xc8] sm:$0xff]  ;;  %v2685_v28 = vpack.c.bf16 %v304_v23, %v302_v22  ;;  %v50_v30 = vld [vmem:[%s5260_s2 + $0xc0] sm:$0xff]  ;;  %v308_v34 = vld [vmem:[%s5259_s0 + $0x290] sm:$0xff] }
  0x1d   :  { %2634 = vmatpush1.bf16.msra.mxu0 %v2633_v53  ;;  %v3178_v53 = vrot.slane %v3042_v47, %v114_v42  ;;  %v33_v47 = vld [vmem:[%s5260_s2 + $0x38] sm:$0xff]  ;;  %v307_v25 = vld [vmem:[%s5259_s0 + $0x288] sm:$0xff]  ;;  %v167_v29 = vmul.f32 %v3051_v50, %v51_v24  ;;  %v56_v42 = vld [vmem:[%s5260_s2 + $0xf0] sm:$0xff] }
  0x1e   :  { %2636 = vmatprep.subr.bf16.mxu0 %v2635_v55  ;;  %v26_v55 = vld [vmem:[%s5260_s2] sm:$0xff]  ;;  %v149_v63 = vmul.f32 %v3051_v50, %v33_v47  ;;  %v311_v36 = vld [vmem:[%s5259_s0 + $0x2a8] sm:$0xff]  ;;  %v313_v37 = vld [vmem:[%s5259_s0 + $0x2b8] sm:$0xff] }
  0x1f   :  { %v148_v7 = vmul.f32 %v3178_v53, %v32_v0  ;;  %v154_v17 = vmul.f32 %v3178_v53, %v38_v10  ;;  %v166_v38 = vmul.f32 %v3178_v53, %v50_v30  ;;  %v312_v46 = vld [vmem:[%s5259_s0 + $0x2b0] sm:$0xff]  ;;  %v63_v48 = vld [vmem:[%s5260_s2 + $0x128] sm:$0xff]  ;;  %v317_v32 = vld [vmem:[%s5259_s0 + $0x2d8] sm:$0xff] }
  0x20   :  { %v315_v49 = vld [vmem:[%s5259_s0 + $0x2c8] sm:$0xff]  ;;  %v62_v57 = vld [vmem:[%s5260_s2 + $0x120] sm:$0xff]  ;;  %v320_v5 = vld [vmem:[%s5259_s0 + $0x2f0] sm:$0xff] }
  0x21   :  { %2638 = vmatpush1.bf16.msra.mxu0 %v2637_v60  ;;  %v297_v60 = vld [vmem:[%s5259_s0 + $0x238] sm:$0xff]  ;;  %v2695_v58 = vpack.c.bf16 %v317_v32, %v315_v49  ;;  %v314_v47 = vld [vmem:[%s5259_s0 + $0x2c0] sm:$0xff]  ;;  %v75_v6 = vld [vmem:[%s5260_s2 + $0x188] sm:$0xff] }
  0x22   :  { %2640 = vmatprep.subr.bf16.mxu0 %v2639_v61  ;;  %v142_v61 = vmul.f32 %v3178_v53, %v26_v55  ;;  %v2675_v1 = vpack.c.bf16 %v297_v60, %v295_v59  ;;  %v316_v59 = vld [vmem:[%s5259_s0 + $0x2d0] sm:$0xff]  ;;  %v69_v60 = vld [vmem:[%s5260_s2 + $0x158] sm:$0xff]  ;;  %v74_v12 = vld [vmem:[%s5260_s2 + $0x180] sm:$0xff] }
  0x23   :  { %v2697_v0 = vpack.c.bf16 %v316_v59, %v314_v47  ;;  %v80_v22 = vld [vmem:[%s5260_s2 + $0x1b0] sm:$0xff]  ;;  %v326_v24 = vld [vmem:[%s5259_s0 + $0x320] sm:$0xff]  ;;  %v99_v32 = vld [vmem:[%s5260_s2 + $0x248] sm:$0xff] }
  0x24   :  { %v336_v49 = vld [vmem:[%s5259_s0 + $0x370] sm:$0xff]  ;;  %v98_v47 = vld [vmem:[%s5260_s2 + $0x240] sm:$0xff] }
  0x25   :  { %2642 = vmatpush1.bf16.msra.mxu0 %v2641_v2  ;;  %v294_v2 = vld [vmem:[%s5259_s0 + $0x220] sm:$0xff] }
  0x26   :  { %2644 = vmatprep.subr.bf16.mxu0 %v2643_v3  ;;  %v296_v3 = vld [vmem:[%s5259_s0 + $0x230] sm:$0xff] }
  0x29   :  { %2646 = vmatpush1.bf16.msra.mxu0 %v2645_v8  ;;  %v2677_v8 = vpack.c.bf16 %v296_v3, %v294_v2  ;;  %v68_v2 = vld [vmem:[%s5260_s2 + $0x150] sm:$0xff] }
  0x2a   :  { %2648 = vmatprep.subr.bf16.mxu0 %v2647_v9  ;;  %v155_v9 = vmul.f32 %v3051_v50, %v39_v4  ;;  %v318_v4 = vld [vmem:[%s5259_s0 + $0x2e0] sm:$0xff] }
  0x2b   :  { %v2701_v10 = vpack.c.bf16 %v320_v5, %v318_v4  ;;  %v104_v4 = vld [vmem:[%s5260_s2 + $0x270] sm:$0xff] }
  0x2d   :  { %2650 = vmatpush1.bf16.msra.mxu0 %v2649_v14  ;;  %v45_v14 = vld [vmem:[%s5260_s2 + $0x98] sm:$0xff] }
  0x2e   :  { %2652 = vmatprep.subr.bf16.mxu0 %v2651_v15  ;;  %v303_v15 = vld [vmem:[%s5259_s0 + $0x268] sm:$0xff]  ;;  %v161_v19 = vmul.f32 %v3051_v50, %v45_v14  ;;  %v322_v14 = vld [vmem:[%s5259_s0 + $0x300] sm:$0xff] }
  0x31   :  { %2654 = vmatpush1.bf16.msra.mxu0 %v2653_v20  ;;  %v44_v20 = vld [vmem:[%s5260_s2 + $0x90] sm:$0xff] }
  0x32   :  { %2656 = vmatprep.subr.bf16.mxu0 %v2655_v21  ;;  %v2683_v21 = vpack.c.bf16 %v305_v16, %v303_v15  ;;  %v324_v15 = vld [vmem:[%s5259_s0 + $0x310] sm:$0xff]  ;;  %v81_v16 = vld [vmem:[%s5260_s2 + $0x1b8] sm:$0xff] }
  0x35   :  { %2658 = vmatpush1.bf16.msra.mxu0 %v2657_v26  ;;  %v309_v26 = vld [vmem:[%s5259_s0 + $0x298] sm:$0xff] }
  0x36   :  { %2660 = vmatprep.subr.bf16.mxu0 %v2659_v27  ;;  %v160_v27 = vmul.f32 %v3178_v53, %v44_v20  ;;  %v2687_v31 = vpack.c.bf16 %v309_v26, %v307_v25  ;;  %v2705_v20 = vpack.c.bf16 %v324_v15, %v322_v14  ;;  %v328_v25 = vld [vmem:[%s5259_s0 + $0x330] sm:$0xff]  ;;  %v87_v26 = vld [vmem:[%s5260_s2 + $0x1e8] sm:$0xff]  ;;  %v346_v14 = vld [vmem:[%s5259_s0 + $0x3c0] sm:$0xff] }
  0x37   :  { %v2709_v30 = vpack.c.bf16 %v328_v25, %v326_v24  ;;  %v348_v15 = vld [vmem:[%s5259_s0 + $0x3d0] sm:$0xff] }
  0x38   :  { %v28_v24 = vld [vmem:[%s5260_s2 + $0x10] sm:$0xff] }
  0x39   :  { %2662 = vmatpush1.bf16.msra.mxu0 %v2661_v33  ;;  %v306_v33 = vld [vmem:[%s5259_s0 + $0x280] sm:$0xff] }
  0x3a   :  { %2664 = vmatprep.subr.bf16.mxu0 %v2663_v35  ;;  %v57_v35 = vld [vmem:[%s5260_s2 + $0xf8] sm:$0xff]  ;;  %v2689_v39 = vpack.c.bf16 %v308_v34, %v306_v33  ;;  %v86_v33 = vld [vmem:[%s5260_s2 + $0x1e0] sm:$0xff] }
  0x3b   :  { %v173_v40 = vmul.f32 %v3051_v50, %v57_v35  ;;  %v330_v35 = vld [vmem:[%s5259_s0 + $0x340] sm:$0xff] }
  0x3d   :  { %2666 = vmatpush1.bf16.msra.mxu0 %v2665_v43  ;;  %v2691_v43 = vpack.c.bf16 %v313_v37, %v311_v36  ;;  %v332_v36 = vld [vmem:[%s5259_s0 + $0x350] sm:$0xff]  ;;  %v93_v37 = vld [vmem:[%s5260_s2 + $0x218] sm:$0xff] }
  0x3e   :  { %2668 = vmatprep.subr.bf16.mxu0 %v2667_v45  ;;  %v310_v45 = vld [vmem:[%s5259_s0 + $0x2a0] sm:$0xff] }
  0x3f   :  { %v2693_v55 = vpack.c.bf16 %v312_v46, %v310_v45  ;;  %v92_v45 = vld [vmem:[%s5260_s2 + $0x210] sm:$0xff] }
  0x41   :  { %2670 = vmatpush1.bf16.msra.mxu0 %v2669_v54  ;;  %v172_v54 = vmul.f32 %v3178_v53, %v56_v42  ;;  %v2713_v42 = vpack.c.bf16 %v332_v36, %v330_v35  ;;  %v34_v35 = vld [vmem:[%s5260_s2 + $0x40] sm:$0xff] }
  0x42   :  { %2672 = vmatprep.subr.bf16.mxu0 %v2671_v56  ;;  %v179_v56 = vmul.f32 %v3051_v50, %v63_v48  ;;  %v334_v48 = vld [vmem:[%s5259_s0 + $0x360] sm:$0xff] }
  0x44   :  { %502 = vmatmul.mubr.f32.vlgmr.msra.gmra.mrb[0].mxu0 %v142_v61  ;;  %v319_v61 = vld [vmem:[%s5259_s0 + $0x2e8] sm:$0xff] }
  0x45   :  { %2674 = vmatpush1.bf16.msra.mxu0 %v2673_v62  ;;  %507 = vmatprep.mubr.f32.mxu0 %v149_v63  ;;  %v321_v62 = vld [vmem:[%s5259_s0 + $0x2f8] sm:$0xff]  ;;  %v178_v63 = vmul.f32 %v3178_v53, %v62_v57  ;;  %v2717_v57 = vpack.c.bf16 %v336_v49, %v334_v48  ;;  %v40_v48 = vld [vmem:[%s5260_s2 + $0x70] sm:$0xff]  ;;  %v47_v49 = vld [vmem:[%s5260_s2 + $0xa8] sm:$0xff] }
  0x46   :  { %2676 = vmatprep.subr.bf16.mxu0 %v2675_v1  ;;  %v185_v1 = vmul.f32 %v3051_v50, %v69_v60  ;;  %v2699_v3 = vpack.c.bf16 %v321_v62, %v319_v61  ;;  %v338_v60 = vld [vmem:[%s5259_s0 + $0x380] sm:$0xff]  ;;  %v340_v61 = vld [vmem:[%s5259_s0 + $0x390] sm:$0xff]  ;;  %v105_v62 = vld [vmem:[%s5260_s2 + $0x278] sm:$0xff] }
  0x48   :  { %508 = vmatmul.mubr.f32.gmra.mrb[2].mxu0 %v148_v7  ;;  %v323_v7 = vld [vmem:[%s5259_s0 + $0x308] sm:$0xff] }
  0x49   :  { %2678 = vmatpush1.bf16.msra.mxu0 %v2677_v8  ;;  %513 = vmatprep.mubr.f32.mxu0 %v155_v9  ;;  %v325_v8 = vld [vmem:[%s5259_s0 + $0x318] sm:$0xff]  ;;  %v184_v9 = vmul.f32 %v3178_v53, %v68_v2  ;;  %v2721_v2 = vpack.c.bf16 %v340_v61, %v338_v60 }
  0x4a   :  { %2680 = vmatprep.subr.bf16.mxu0 %v2679_v11  ;;  %v191_v11 = vmul.f32 %v3051_v50, %v75_v6  ;;  %v2703_v13 = vpack.c.bf16 %v325_v8, %v323_v7  ;;  %v342_v6 = vld [vmem:[%s5259_s0 + $0x3a0] sm:$0xff]  ;;  %v344_v7 = vld [vmem:[%s5259_s0 + $0x3b0] sm:$0xff]  ;;  %v29_v8 = vld [vmem:[%s5260_s2 + $0x18] sm:$0xff] }
  0x4b   :  { %v53_v61 = vld [vmem:[%s5260_s2 + $0xd8] sm:$0xff] }
  0x4c   :  { %514 = vmatmul.mubr.f32.gmra.mrb[4].mxu0 %v154_v17  ;;  %v327_v17 = vld [vmem:[%s5259_s0 + $0x328] sm:$0xff] }
  0x4d   :  { %2682 = vmatpush1.bf16.msra.mxu0 %v2681_v18  ;;  %519 = vmatprep.mubr.f32.mxu0 %v161_v19  ;;  %v329_v18 = vld [vmem:[%s5259_s0 + $0x338] sm:$0xff]  ;;  %v190_v19 = vmul.f32 %v3178_v53, %v74_v12  ;;  %v145_v12 = vmul.f32 %v3054_v51, %v29_v8 }
  0x4e   :  { %2684 = vmatprep.subr.bf16.mxu0 %v2683_v21  ;;  %v197_v21 = vmul.f32 %v3051_v50, %v81_v16  ;;  %v2707_v23 = vpack.c.bf16 %v329_v18, %v327_v17  ;;  %v351_v16 = vld [vmem:[%s5259_s0 + $0x3e8] sm:$0xff]  ;;  %v2729_v17 = vpack.c.bf16 %v348_v15, %v346_v14  ;;  %v58_v14 = vld [vmem:[%s5260_s2 + $0x100] sm:$0xff] }
  0x50   :  { %520 = vmatmul.mubr.f32.gmra.mrb[6].mxu0 %v160_v27  ;;  %v331_v27 = vld [vmem:[%s5259_s0 + $0x348] sm:$0xff] }
  0x51   :  { %2686 = vmatpush1.bf16.msra.mxu0 %v2685_v28  ;;  %525 = vmatprep.mubr.f32.mxu0 %v167_v29  ;;  %v333_v28 = vld [vmem:[%s5259_s0 + $0x358] sm:$0xff]  ;;  %v196_v29 = vmul.f32 %v3178_v53, %v80_v22 }
  0x52   :  { %2688 = vmatprep.subr.bf16.mxu0 %v2687_v31  ;;  %v203_v31 = vmul.f32 %v3051_v50, %v87_v26  ;;  %v2711_v34 = vpack.c.bf16 %v333_v28, %v331_v27  ;;  %v357_v22 = vld [vmem:[%s5259_s0 + $0x418] sm:$0xff]  ;;  %v354_v26 = vld [vmem:[%s5259_s0 + $0x400] sm:$0xff]  ;;  %v356_v27 = vld [vmem:[%s5259_s0 + $0x410] sm:$0xff] }
  0x53   :  { %v35_v28 = vld [vmem:[%s5260_s2 + $0x48] sm:$0xff] }
  0x54   :  { %526 = vmatmul.mubr.f32.gmra.mrb[8].mxu0 %v166_v38  ;;  %v335_v38 = vld [vmem:[%s5259_s0 + $0x368] sm:$0xff] }
  0x55   :  { %2690 = vmatpush1.bf16.msra.mxu0 %v2689_v39  ;;  %531 = vmatprep.mubr.f32.mxu0 %v173_v40  ;;  %v337_v39 = vld [vmem:[%s5259_s0 + $0x378] sm:$0xff]  ;;  %v202_v40 = vmul.f32 %v3178_v53, %v86_v33  ;;  %v2737_v33 = vpack.c.bf16 %v356_v27, %v354_v26  ;;  %v378_v27 = vld [vmem:[%s5259_s0 + $0x4c0] sm:$0xff] }
  0x56   :  { %2692 = vmatprep.subr.bf16.mxu0 %v2691_v43  ;;  %v209_v43 = vmul.f32 %v3051_v50, %v93_v37  ;;  %v2715_v46 = vpack.c.bf16 %v337_v39, %v335_v38  ;;  %v41_v37 = vld [vmem:[%s5260_s2 + $0x78] sm:$0xff]  ;;  %v358_v38 = vld [vmem:[%s5259_s0 + $0x420] sm:$0xff]  ;;  %v360_v39 = vld [vmem:[%s5259_s0 + $0x430] sm:$0xff] }
  0x58   :  { %532 = vmatmul.mubr.f32.gmra.mrb[10].mxu0 %v172_v54  ;;  %v339_v54 = vld [vmem:[%s5259_s0 + $0x388] sm:$0xff] }
  0x59   :  { %2694 = vmatpush1.bf16.msra.mxu0 %v2693_v55  ;;  %537 = vmatprep.mubr.f32.mxu0 %v179_v56  ;;  %v341_v55 = vld [vmem:[%s5259_s0 + $0x398] sm:$0xff]  ;;  %v208_v56 = vmul.f32 %v3178_v53, %v92_v45  ;;  %v157_v45 = vmul.f32 %v3054_v51, %v41_v37 }
  0x5a   :  { %2696 = vmatprep.subr.bf16.mxu0 %v2695_v58  ;;  %v215_v58 = vmul.f32 %v3051_v50, %v99_v32  ;;  %v2719_v59 = vpack.c.bf16 %v341_v55, %v339_v54  ;;  %v362_v54 = vld [vmem:[%s5259_s0 + $0x440] sm:$0xff]  ;;  %v364_v55 = vld [vmem:[%s5259_s0 + $0x450] sm:$0xff] }
  0x5b   :  { %v2745_v60 = vpack.c.bf16 %v364_v55, %v362_v54  ;;  %v386_v54 = vld [vmem:[%s5259_s0 + $0x500] sm:$0xff]  ;;  %v388_v55 = vld [vmem:[%s5259_s0 + $0x510] sm:$0xff] }
  0x5c   :  { %538 = vmatmul.mubr.f32.gmra.mrb[12].mxu0 %v178_v63  ;;  %v343_v63 = vld [vmem:[%s5259_s0 + $0x3a8] sm:$0xff] }
  0x5d   :  { %2698 = vmatpush1.bf16.msra.mxu0 %v2697_v0  ;;  %543 = vmatprep.mubr.f32.mxu0 %v185_v1  ;;  %v345_v0 = vld [vmem:[%s5259_s0 + $0x3b8] sm:$0xff]  ;;  %v214_v1 = vmul.f32 %v3178_v53, %v98_v47  ;;  %v163_v47 = vmul.f32 %v3054_v51, %v47_v49  ;;  %v83_v49 = vld [vmem:[%s5260_s2 + $0x1c8] sm:$0xff] }
  0x5e   :  { %2700 = vmatprep.subr.bf16.mxu0 %v2699_v3  ;;  %v221_v3 = vmul.f32 %v3051_v50, %v105_v62  ;;  %v2723_v5 = vpack.c.bf16 %v345_v0, %v343_v63  ;;  %v347_v50 = vld [vmem:[%s5259_s0 + $0x3c8] sm:$0xff]  ;;  %v366_v63 = vld [vmem:[%s5259_s0 + $0x460] sm:$0xff]  ;;  %v368_v0 = vld [vmem:[%s5259_s0 + $0x470] sm:$0xff] }
  0x60   :  { %544 = vmatmul.mubr.f32.gmra.mrb[14].mxu0 %v184_v9  ;;  %v349_v9 = vld [vmem:[%s5259_s0 + $0x3d8] sm:$0xff] }
  0x61   :  { %2702 = vmatpush1.bf16.msra.mxu0 %v2701_v10  ;;  %549 = vmatprep.mubr.f32.mxu0 %v191_v11  ;;  %v220_v10 = vmul.f32 %v3178_v53, %v104_v4  ;;  %v2725_v11 = vpack.c.bf16 %v344_v7, %v342_v6  ;;  %v353_v53 = vld [vmem:[%s5259_s0 + $0x3f8] sm:$0xff]  ;;  %v169_v4 = vmul.f32 %v3054_v51, %v53_v61  ;;  %v59_v7 = vld [vmem:[%s5260_s2 + $0x108] sm:$0xff] }
  0x62   :  { %2704 = vmatprep.subr.bf16.mxu0 %v2703_v13  ;;  %v2727_v13 = vpack.c.bf16 %v349_v9, %v347_v50  ;;  %v2731_v18 = vpack.c.bf16 %v353_v53, %v351_v16  ;;  %v2749_v6 = vpack.c.bf16 %v368_v0, %v366_v63  ;;  %v370_v50 = vld [vmem:[%s5259_s0 + $0x480] sm:$0xff]  ;;  %v372_v9 = vld [vmem:[%s5259_s0 + $0x490] sm:$0xff]  ;;  %v65_v16 = vld [vmem:[%s5260_s2 + $0x138] sm:$0xff] }
  0x63   :  { %v2753_v15 = vpack.c.bf16 %v372_v9, %v370_v50  ;;  %v89_v61 = vld [vmem:[%s5260_s2 + $0x1f8] sm:$0xff]  ;;  %v390_v63 = vld [vmem:[%s5259_s0 + $0x520] sm:$0xff]  ;;  %v392_v0 = vld [vmem:[%s5259_s0 + $0x530] sm:$0xff] }
  0x64   :  { %550 = vmatmul.mubr.f32.gmra.mrb[16].mxu0 %v190_v19  ;;  %v350_v19 = vld [vmem:[%s5259_s0 + $0x3e0] sm:$0xff]  ;;  %v101_v50 = vld [vmem:[%s5260_s2 + $0x258] sm:$0xff] }
  0x65   :  { %2706 = vmatpush1.bf16.msra.mxu0 %v2705_v20  ;;  %555 = vmatprep.mubr.f32.mxu0 %v197_v21  ;;  %v352_v20 = vld [vmem:[%s5259_s0 + $0x3f0] sm:$0xff]  ;;  %v355_v21 = vld [vmem:[%s5259_s0 + $0x408] sm:$0xff] }
  0x66   :  { %2708 = vmatprep.subr.bf16.mxu0 %v2707_v23  ;;  %v2733_v23 = vpack.c.bf16 %v352_v20, %v350_v19  ;;  %v2735_v25 = vpack.c.bf16 %v357_v22, %v355_v21  ;;  %v379_v19 = vld [vmem:[%s5259_s0 + $0x4c8] sm:$0xff]  ;;  %v381_v20 = vld [vmem:[%s5259_s0 + $0x4d8] sm:$0xff]  ;;  %v174_v21 = vmul.f32 %v3057_v52, %v58_v14  ;;  %v181_v22 = vmul.f32 %v3054_v51, %v65_v16 }
  0x67   :  { %v2759_v26 = vpack.c.bf16 %v381_v20, %v379_v19  ;;  %v31_v16 = vld [vmem:[%s5260_s2 + $0x28] sm:$0xff] }
  0x68   :  { %556 = vmatmul.mubr.f32.gmra.mrb[18].mxu0 %v196_v29  ;;  %v359_v29 = vld [vmem:[%s5259_s0 + $0x428] sm:$0xff] }
  0x69   :  { %2710 = vmatpush1.bf16.msra.mxu0 %v2709_v30  ;;  %561 = vmatprep.mubr.f32.mxu0 %v203_v31  ;;  %v361_v30 = vld [vmem:[%s5259_s0 + $0x438] sm:$0xff]  ;;  %v144_v31 = vmul.f32 %v3057_v52, %v28_v24 }
  0x6a   :  { %2712 = vmatprep.subr.bf16.mxu0 %v2711_v34  ;;  %v151_v34 = vmul.f32 %v3054_v51, %v35_v28  ;;  %v2739_v36 = vpack.c.bf16 %v361_v30, %v359_v29  ;;  %v380_v28 = vld [vmem:[%s5259_s0 + $0x4d0] sm:$0xff]  ;;  %v383_v29 = vld [vmem:[%s5259_s0 + $0x4e8] sm:$0xff]  ;;  %v385_v30 = vld [vmem:[%s5259_s0 + $0x4f8] sm:$0xff] }
  0x6b   :  { %v2763_v37 = vpack.c.bf16 %v385_v30, %v383_v29  ;;  %v55_v29 = vld [vmem:[%s5260_s2 + $0xe8] sm:$0xff] }
  0x6c   :  { %562 = vmatmul.mubr.f32.gmra.mrb[20].mxu0 %v202_v40  ;;  %v363_v40 = vld [vmem:[%s5259_s0 + $0x448] sm:$0xff] }
  0x6d   :  { %2714 = vmatpush1.bf16.msra.mxu0 %v2713_v42  ;;  %567 = vmatprep.mubr.f32.mxu0 %v209_v43  ;;  %v365_v42 = vld [vmem:[%s5259_s0 + $0x458] sm:$0xff]  ;;  %v150_v43 = vmul.f32 %v3057_v52, %v34_v35  ;;  %v2761_v35 = vpack.c.bf16 %v380_v28, %v378_v27  ;;  %v48_v28 = vld [vmem:[%s5260_s2 + $0xb0] sm:$0xff] }
  0x6e   :  { %2716 = vmatprep.subr.bf16.mxu0 %v2715_v46  ;;  %v2741_v46 = vpack.c.bf16 %v360_v39, %v358_v38  ;;  %v2743_v32 = vpack.c.bf16 %v365_v42, %v363_v40  ;;  %v382_v38 = vld [vmem:[%s5259_s0 + $0x4e0] sm:$0xff]  ;;  %v384_v39 = vld [vmem:[%s5259_s0 + $0x4f0] sm:$0xff]  ;;  %v387_v40 = vld [vmem:[%s5259_s0 + $0x508] sm:$0xff]  ;;  %v164_v30 = vmul.f32 %v3163_v44, %v48_v28 }
  0x6f   :  { %v389_v42 = vld [vmem:[%s5259_s0 + $0x518] sm:$0xff] }
  0x70   :  { %568 = vmatmul.mubr.f32.gmra.mrb[22].mxu0 %v208_v56  ;;  %v367_v56 = vld [vmem:[%s5259_s0 + $0x468] sm:$0xff] }
  0x71   :  { %2718 = vmatpush1.bf16.msra.mxu0 %v2717_v57  ;;  %573 = vmatprep.mubr.f32.mxu0 %v215_v58  ;;  %v369_v57 = vld [vmem:[%s5259_s0 + $0x478] sm:$0xff]  ;;  %v156_v58 = vmul.f32 %v3057_v52, %v40_v48  ;;  %v2765_v48 = vpack.c.bf16 %v384_v39, %v382_v38  ;;  %v67_v38 = vld [vmem:[%s5260_s2 + $0x148] sm:$0xff] }
  0x72   :  { %2720 = vmatprep.subr.bf16.mxu0 %v2719_v59  ;;  %v46_v59 = vld [vmem:[%s5260_s2 + $0xa0] sm:$0xff]  ;;  %v2747_v62 = vpack.c.bf16 %v369_v57, %v367_v56  ;;  %v391_v56 = vld [vmem:[%s5259_s0 + $0x528] sm:$0xff]  ;;  %v393_v57 = vld [vmem:[%s5259_s0 + $0x538] sm:$0xff] }
  0x74   :  { %574 = vmatmul.mubr.f32.gmra.mrb[24].mxu0 %v214_v1  ;;  %v371_v1 = vld [vmem:[%s5259_s0 + $0x488] sm:$0xff] }
  0x75   :  { %2722 = vmatpush1.bf16.msra.mxu0 %v2721_v2  ;;  %579 = vmatprep.mubr.f32.mxu0 %v221_v3  ;;  %v373_v2 = vld [vmem:[%s5259_s0 + $0x498] sm:$0xff]  ;;  %v162_v3 = vmul.f32 %v3057_v52, %v46_v59  ;;  %v82_v59 = vld [vmem:[%s5260_s2 + $0x1c0] sm:$0xff] }
  0x76   :  { %2724 = vmatprep.subr.bf16.mxu0 %v2723_v5  ;;  %v52_v5 = vld [vmem:[%s5260_s2 + $0xd0] sm:$0xff]  ;;  %v2751_v8 = vpack.c.bf16 %v373_v2, %v371_v1  ;;  %v198_v1 = vmul.f32 %v3057_v52, %v82_v59  ;;  %v205_v2 = vmul.f32 %v3054_v51, %v89_v61  ;;  %v91_v59 = vld [vmem:[%s5260_s2 + $0x208] sm:$0xff] }
  0x77   :  { %v207_v61 = vmul.f32 %v3159_v41, %v91_v59 }
  0x78   :  { %580 = vmatmul.mubr.f32.gmra.mrb[26].mxu0 %v220_v10  ;;  %v375_v10 = vld [vmem:[%s5259_s0 + $0x4a8] sm:$0xff] }
  0x79   :  { %2726 = vmatpush1.bf16.msra.mxu0 %v2725_v11  ;;  %650 = vmatprep.mubr.f32.mxu0 %v145_v12  ;;  %v377_v11 = vld [vmem:[%s5259_s0 + $0x4b8] sm:$0xff]  ;;  %v168_v12 = vmul.f32 %v3057_v52, %v52_v5  ;;  %v95_v5 = vld [vmem:[%s5260_s2 + $0x228] sm:$0xff] }
  0x7a   :  { %2728 = vmatprep.subr.bf16.mxu0 %v2727_v13  ;;  %v175_v13 = vmul.f32 %v3054_v51, %v59_v7  ;;  %v2755_v53 = vpack.c.bf16 %v377_v11, %v375_v10  ;;  %v211_v7 = vmul.f32 %v3054_v51, %v95_v5  ;;  %v217_v10 = vmul.f32 %v3054_v51, %v101_v50  ;;  %v100_v11 = vld [vmem:[%s5260_s2 + $0x250] sm:$0xff] }
  0x7d   :  { %2730 = vmatpush1.bf16.msra.mxu0 %v2729_v17  ;;  %v374_v17 = vld [vmem:[%s5259_s0 + $0x4a0] sm:$0xff] }
  0x7e   :  { %2732 = vmatprep.subr.bf16.mxu0 %v2731_v18  ;;  %v376_v18 = vld [vmem:[%s5259_s0 + $0x4b0] sm:$0xff] }
  0x7f   :  { %v2757_v24 = vpack.c.bf16 %v376_v18, %v374_v17  ;;  %v147_v17 = vmul.f32 %v3159_v41, %v31_v16  ;;  %v30_v18 = vld [vmem:[%s5260_s2 + $0x20] sm:$0xff] }
  0x80   :  { %v146_v19 = vmul.f32 %v3163_v44, %v30_v18 }
  0x81   :  { %2734 = vmatpush1.bf16.msra.mxu0 %v2733_v23  ;;  %v64_v23 = vld [vmem:[%s5260_s2 + $0x130] sm:$0xff] }
  0x82   :  { %2736 = vmatprep.subr.bf16.mxu0 %v2735_v25  ;;  %v71_v25 = vld [vmem:[%s5260_s2 + $0x168] sm:$0xff] }
  0x84   :  { %651 = vmatmul.mubr.f32.vlgmr.msra.gmra.mrb[0].mxu0 %v144_v31  ;;  %v180_v31 = vmul.f32 %v3057_v52, %v64_v23 }
  0x85   :  { %2738 = vmatpush1.bf16.msra.mxu0 %v2737_v33  ;;  %656 = vmatprep.mubr.f32.mxu0 %v151_v34  ;;  %v187_v33 = vmul.f32 %v3054_v51, %v71_v25  ;;  %v70_v34 = vld [vmem:[%s5260_s2 + $0x160] sm:$0xff]  ;;  %v49_v25 = vld [vmem:[%s5260_s2 + $0xb8] sm:$0xff] }
  0x86   :  { %2740 = vmatprep.subr.bf16.mxu0 %v2739_v36  ;;  %v77_v36 = vld [vmem:[%s5260_s2 + $0x198] sm:$0xff]  ;;  %v165_v27 = vmul.f32 %v3159_v41, %v49_v25 }
  0x88   :  { %657 = vmatmul.mubr.f32.gmra.mrb[2].mxu0 %v150_v43  ;;  %v186_v43 = vmul.f32 %v3057_v52, %v70_v34  ;;  %v61_v34 = vld [vmem:[%s5260_s2 + $0x118] sm:$0xff] }
  0x89   :  { %662 = vmatprep.mubr.f32.mxu0 %v157_v45  ;;  %2742 = vmatpush1.bf16.msra.mxu0 %v2741_v46  ;;  %v193_v45 = vmul.f32 %v3054_v51, %v77_v36  ;;  %v76_v46 = vld [vmem:[%s5260_s2 + $0x190] sm:$0xff]  ;;  %v177_v36 = vmul.f32 %v3159_v41, %v61_v34 }
  0x8a   :  { %2744 = vmatprep.subr.bf16.mxu0 %v2743_v32  ;;  %v2767_v32 = vpack.c.bf16 %v389_v42, %v387_v40  ;;  %v183_v40 = vmul.f32 %v3159_v41, %v67_v38  ;;  %v66_v42 = vld [vmem:[%s5260_s2 + $0x140] sm:$0xff] }
  0x8c   :  { %663 = vmatmul.mubr.f32.gmra.mrb[4].mxu0 %v156_v58  ;;  %v192_v58 = vmul.f32 %v3057_v52, %v76_v46 }
  0x8d   :  { %668 = vmatprep.mubr.f32.mxu0 %v163_v47  ;;  %2746 = vmatpush1.bf16.msra.mxu0 %v2745_v60  ;;  %v199_v47 = vmul.f32 %v3054_v51, %v83_v49  ;;  %v2769_v60 = vpack.c.bf16 %v388_v55, %v386_v54  ;;  %v79_v49 = vld [vmem:[%s5260_s2 + $0x1a8] sm:$0xff]  ;;  %v78_v55 = vld [vmem:[%s5260_s2 + $0x1a0] sm:$0xff] }
  0x8e   :  { %2748 = vmatprep.subr.bf16.mxu0 %v2747_v62  ;;  %v2771_v62 = vpack.c.bf16 %v393_v57, %v391_v56  ;;  %v195_v54 = vmul.f32 %v3159_v41, %v79_v49  ;;  %v85_v56 = vld [vmem:[%s5260_s2 + $0x1d8] sm:$0xff]  ;;  %v194_v57 = vmul.f32 %v3163_v44, %v78_v55 }
  0x90   :  { %669 = vmatmul.mubr.f32.gmra.mrb[6].mxu0 %v162_v3  ;;  %v88_v3 = vld [vmem:[%s5260_s2 + $0x1f0] sm:$0xff] }
  0x91   :  { %674 = vmatprep.mubr.f32.mxu0 %v169_v4  ;;  %2750 = vmatpush1.bf16.msra.mxu0 %v2749_v6  ;;  %v2773_v4 = vpack.c.bf16 %v392_v0, %v390_v63  ;;  %v204_v6 = vmul.f32 %v3057_v52, %v88_v3  ;;  %v97_v63 = vld [vmem:[%s5260_s2 + $0x238] sm:$0xff]  ;;  %v103_v3 = vld [vmem:[%s5260_s2 + $0x268] sm:$0xff] }
  0x92   :  { %2752 = vmatprep.subr.bf16.mxu0 %v2751_v8  ;;  %v94_v8 = vld [vmem:[%s5260_s2 + $0x220] sm:$0xff]  ;;  %v219_v5 = vmul.f32 %v3159_v41, %v103_v3 }
  0x93   :  { %v210_v9 = vmul.f32 %v3057_v52, %v94_v8 }
  0x94   :  { %675 = vmatmul.mubr.f32.gmra.mrb[8].mxu0 %v168_v12  ;;  %v107_v12 = vld [vmem:[%s5260_s2 + $0x288] sm:$0xff] }
  0x95   :  { %680 = vmatprep.mubr.f32.mxu0 %v175_v13  ;;  %2754 = vmatpush1.bf16.msra.mxu0 %v2753_v15  ;;  %v216_v13 = vmul.f32 %v3057_v52, %v100_v11  ;;  %v223_v14 = vmul.f32 %v3054_v51, %v107_v12  ;;  %v106_v15 = vld [vmem:[%s5260_s2 + $0x280] sm:$0xff]  ;;  %v37_v51 = vld [vmem:[%s5260_s2 + $0x58] sm:$0xff] }
  0x96   :  { %2756 = vmatprep.subr.bf16.mxu0 %v2755_v53  ;;  %v222_v53 = vmul.f32 %v3057_v52, %v106_v15  ;;  %v153_v20 = vmul.f32 %v3159_v41, %v37_v51  ;;  %v36_v52 = vld [vmem:[%s5260_s2 + $0x50] sm:$0xff] }
  0x98   :  { %681 = vmatmul.mubr.f32.gmra.mrb[10].mxu0 %v174_v21  ;;  %v43_v21 = vld [vmem:[%s5260_s2 + $0x88] sm:$0xff] }
  0x99   :  { %686 = vmatprep.mubr.f32.mxu0 %v181_v22  ;;  %2758 = vmatpush1.bf16.msra.mxu0 %v2757_v24  ;;  %v152_v22 = vmul.f32 %v3163_v44, %v36_v52  ;;  %v159_v23 = vmul.f32 %v3159_v41, %v43_v21  ;;  %v42_v24 = vld [vmem:[%s5260_s2 + $0x80] sm:$0xff] }
  0x9a   :  { %2760 = vmatprep.subr.bf16.mxu0 %v2759_v26  ;;  %v158_v26 = vmul.f32 %v3163_v44, %v42_v24 }
  0x9c   :  { %687 = vmatmul.mubr.f32.gmra.mrb[12].mxu0 %v180_v31  ;;  %v171_v31 = vmul.f32 %v3159_v41, %v55_v29 }
  0x9d   :  { %692 = vmatprep.mubr.f32.mxu0 %v187_v33  ;;  %2762 = vmatpush1.bf16.msra.mxu0 %v2761_v35  ;;  %v54_v33 = vld [vmem:[%s5260_s2 + $0xe0] sm:$0xff] }
  0x9e   :  { %2764 = vmatprep.subr.bf16.mxu0 %v2763_v37  ;;  %v170_v35 = vmul.f32 %v3163_v44, %v54_v33  ;;  %v60_v37 = vld [vmem:[%s5260_s2 + $0x110] sm:$0xff] }
  0x9f   :  { %v176_v39 = vmul.f32 %v3163_v44, %v60_v37 }
  0xa0   :  { %693 = vmatmul.mubr.f32.gmra.mrb[14].mxu0 %v186_v43  ;;  %v73_v43 = vld [vmem:[%s5260_s2 + $0x178] sm:$0xff] }
  0xa1   :  { %698 = vmatprep.mubr.f32.mxu0 %v193_v45  ;;  %2766 = vmatpush1.bf16.msra.mxu0 %v2765_v48  ;;  %v182_v45 = vmul.f32 %v3163_v44, %v66_v42  ;;  %v189_v46 = vmul.f32 %v3159_v41, %v73_v43  ;;  %v72_v48 = vld [vmem:[%s5260_s2 + $0x170] sm:$0xff] }
  0xa2   :  { %2768 = vmatprep.subr.bf16.mxu0 %v2767_v32  ;;  %v188_v32 = vmul.f32 %v3163_v44, %v72_v48 }
  0xa4   :  { %699 = vmatmul.mubr.f32.gmra.mrb[16].mxu0 %v192_v58  ;;  %v201_v58 = vmul.f32 %v3159_v41, %v85_v56 }
  0xa5   :  { %704 = vmatprep.mubr.f32.mxu0 %v199_v47  ;;  %2770 = vmatpush1.bf16.msra.mxu0 %v2769_v60  ;;  %v84_v47 = vld [vmem:[%s5260_s2 + $0x1d0] sm:$0xff] }
  0xa6   :  { %2772 = vmatprep.subr.bf16.mxu0 %v2771_v62  ;;  %v200_v60 = vmul.f32 %v3163_v44, %v84_v47  ;;  %v90_v62 = vld [vmem:[%s5260_s2 + $0x200] sm:$0xff] }
  0xa7   :  { %v206_v0 = vmul.f32 %v3163_v44, %v90_v62 }
  0xa8   :  { %705 = vmatmul.mubr.f32.gmra.mrb[18].mxu0 %v198_v1  ;;  %v213_v1 = vmul.f32 %v3159_v41, %v97_v63 }
  0xa9   :  { %710 = vmatprep.mubr.f32.mxu0 %v205_v2  ;;  %2774 = vmatpush1.bf16.msra.mxu0 %v2773_v4  ;;  %v96_v2 = vld [vmem:[%s5260_s2 + $0x230] sm:$0xff] }
  0xaa   :  { %v212_v4 = vmul.f32 %v3163_v44, %v96_v2 }
  0xac   :  { %711 = vmatmul.mubr.f32.gmra.mrb[20].mxu0 %v204_v6  ;;  %v102_v6 = vld [vmem:[%s5260_s2 + $0x260] sm:$0xff] }
  0xad   :  { %716 = vmatprep.mubr.f32.mxu0 %v211_v7  ;;  %v109_v7 = vld [vmem:[%s5260_s2 + $0x298] sm:$0xff]  ;;  %v218_v8 = vmul.f32 %v3163_v44, %v102_v6 }
  0xae   :  { %v225_v50 = vmul.f32 %v3159_v41, %v109_v7 }
  0xb0   :  { %717 = vmatmul.mubr.f32.gmra.mrb[22].mxu0 %v210_v9  ;;  %v108_v9 = vld [vmem:[%s5260_s2 + $0x290] sm:$0xff] }
  0xb1   :  { %722 = vmatprep.mubr.f32.mxu0 %v217_v10  ;;  %v224_v10 = vmul.f32 %v3163_v44, %v108_v9 }
  0xb4   :  { %723 = vmatmul.mubr.f32.gmra.mrb[24].mxu0 %v216_v13 }
  0xb5   :  { %728 = vmatprep.mubr.f32.mxu0 %v223_v14 }
  0xb8   :  { %729 = vmatmul.mubr.f32.gmra.mrb[26].mxu0 %v222_v53 }
  0xb9   :  { %2509 = vmatprep.mubr.msk.f32.mxu0 %vm394_vm0, %v147_v17 }
  0xbc   :  { %800 = vmatmul.mubr.f32.vlgmr.msra.gmra.mrb[0].mxu0 %v146_v19 }
  0xbd   :  { %2510 = vmatprep.mubr.msk.f32.mxu0 %vm394_vm0, %v153_v20 }
  0xc0   :  { %806 = vmatmul.mubr.f32.gmra.mrb[2].mxu0 %v152_v22 }
  0xc1   :  { %2511 = vmatprep.mubr.msk.f32.mxu0 %vm394_vm0, %v159_v23 }
  0xc4   :  { %812 = vmatmul.mubr.f32.gmra.mrb[4].mxu0 %v158_v26 }
  0xc5   :  { %2512 = vmatprep.mubr.msk.f32.mxu0 %vm394_vm0, %v165_v27 }
  0xc8   :  { %818 = vmatmul.mubr.f32.gmra.mrb[6].mxu0 %v164_v30 }
  0xc9   :  { %2513 = vmatprep.mubr.msk.f32.mxu0 %vm394_vm0, %v171_v31 }
  0xcc   :  { %824 = vmatmul.mubr.f32.gmra.mrb[8].mxu0 %v170_v35 }
  0xcd   :  { %2514 = vmatprep.mubr.msk.f32.mxu0 %vm394_vm0, %v177_v36 }
  0xd0   :  { %830 = vmatmul.mubr.f32.gmra.mrb[10].mxu0 %v176_v39 }
  0xd1   :  { %2515 = vmatprep.mubr.msk.f32.mxu0 %vm394_vm0, %v183_v40 }
  0xd4   :  { %836 = vmatmul.mubr.f32.gmra.mrb[12].mxu0 %v182_v45 }
  0xd5   :  { %2516 = vmatprep.mubr.msk.f32.mxu0 %vm394_vm0, %v189_v46 }
  0xd8   :  { %842 = vmatmul.mubr.f32.gmra.mrb[14].mxu0 %v188_v32 }
  0xd9   :  { %2517 = vmatprep.mubr.msk.f32.mxu0 %vm394_vm0, %v195_v54 }
  0xdc   :  { %848 = vmatmul.mubr.f32.gmra.mrb[16].mxu0 %v194_v57 }
  0xdd   :  { %2518 = vmatprep.mubr.msk.f32.mxu0 %vm394_vm0, %v201_v58 }
  0xe0   :  { %854 = vmatmul.mubr.f32.gmra.mrb[18].mxu0 %v200_v60 }
  0xe1   :  { %2519 = vmatprep.mubr.msk.f32.mxu0 %vm394_vm0, %v207_v61 }
  0xe4   :  { %860 = vmatmul.mubr.f32.gmra.mrb[20].mxu0 %v206_v0 }
  0xe5   :  { %2520 = vmatprep.mubr.msk.f32.mxu0 %vm394_vm0, %v213_v1 }
  0xe8   :  { %866 = vmatmul.mubr.f32.gmra.mrb[22].mxu0 %v212_v4 }
  0xe9   :  { %2521 = vmatprep.mubr.msk.f32.mxu0 %vm394_vm0, %v219_v5 }
  0xec   :  { %872 = vmatmul.mubr.f32.gmra.mrb[24].mxu0 %v218_v8 }
  0xed   :  { %2522 = vmatprep.mubr.msk.f32.mxu0 %vm394_vm0, %v225_v50 }
  0xf0   :  { %878 = vmatmul.mubr.f32.gmra.mrb[26].mxu0 %v224_v10 }
 0x18f   :  { %v3832_v11 = vpop.f32.mrb[0].mxu0 }
 0x190   :  { %v3834_v12 = vpop.f32.mrb[1].mxu0  ;;  %v941_v15 = vmul.f32 %v3832_v11, %v3832_v11 }
 0x191   :  { %v885_v13 = vsel %vm884_vm1, %v3834_v12, 0.0  ;;  %v942_v41 = vmul.f32 %v3834_v12, %v3834_v12 }
 0x192   :  { %v886_v14 = vadd.f32 %v885_v13, %v3832_v11 }
 0x193   :  { %v3843_v44 = vpop.f32.mrb[2].mxu0  ;;  %v969_v16 = vsel %vm884_vm1, %v942_v41, 0.0 }
 0x194   :  { %887 = vadd.xlane.f32.xlu0 %v886_v14  ;;  %v3846_v53 = vpop.f32.mrb[3].mxu0  ;;  %v970_v17 = vadd.f32 %v969_v16, %v941_v15  ;;  %v943_v20 = vmul.f32 %v3843_v44, %v3843_v44 }
 0x195   :  { %v944_v18 = vmul.f32 %v3846_v53, %v3846_v53  ;;  %v889_v51 = vsel %vm884_vm1, %v3846_v53, 0.0 }
 0x196   :  { %971 = vadd.xlane.f32.xlu1 %v970_v17  ;;  %v890_v19 = vadd.f32 %v889_v51, %v3843_v44 }
 0x197   :  { %v3855_v52 = vpop.f32.mrb[4].mxu0  ;;  %v973_v21 = vsel %vm884_vm1, %v944_v18, 0.0 }
 0x198   :  { %891 = vadd.xlane.f32.xlu0 %v890_v19  ;;  %v3858_v22 = vpop.f32.mrb[5].mxu0  ;;  %v974_v23 = vadd.f32 %v973_v21, %v943_v20  ;;  %v945_v27 = vmul.f32 %v3855_v52, %v3855_v52 }
 0x199   :  { %v946_v24 = vmul.f32 %v3858_v22, %v3858_v22  ;;  %v893_v25 = vsel %vm884_vm1, %v3858_v22, 0.0 }
 0x19a   :  { %975 = vadd.xlane.f32.xlu1 %v974_v23  ;;  %v894_v26 = vadd.f32 %v893_v25, %v3855_v52 }
 0x19b   :  { %v3867_v28 = vpop.f32.mrb[6].mxu0  ;;  %v977_v29 = vsel %vm884_vm1, %v946_v24, 0.0 }
 0x19c   :  { %895 = vadd.xlane.f32.xlu0 %v894_v26  ;;  %v3870_v30 = vpop.f32.mrb[7].mxu0  ;;  %v978_v31 = vadd.f32 %v977_v29, %v945_v27  ;;  %v947_v36 = vmul.f32 %v3867_v28, %v3867_v28  ;;  %v2905_v26 = vmov 0  }
 0x19d   :  { %v948_v33 = vmul.f32 %v3870_v30, %v3870_v30  ;;  %v897_v34 = vsel %vm884_vm1, %v3870_v30, 0.0  ;;  %2875 = vset.pattern.permute.xlu0 %v2905_v26  ;;  %2876 = vset.pattern.permute.xlu1 %v2905_v26 }
 0x19e   :  { %v898_v35 = vadd.f32 %v897_v34, %v3867_v28 }
 0x19f   :  { %v3879_v37 = vpop.f32.mrb[8].mxu0  ;;  %v981_v38 = vsel %vm884_vm1, %v948_v33, 0.0 }
 0x1a0   :  { %979 = vadd.xlane.f32.xlu0 %v978_v31  ;;  %899 = vadd.xlane.f32.xlu1 %v898_v35  ;;  %v3882_v39 = vpop.f32.mrb[9].mxu0  ;;  %v982_v40 = vadd.f32 %v981_v38, %v947_v36  ;;  %v949_v46 = vmul.f32 %v3879_v37, %v3879_v37 }
 0x1a1   :  { %v950_v42 = vmul.f32 %v3882_v39, %v3882_v39  ;;  %v901_v43 = vsel %vm884_vm1, %v3882_v39, 0.0 }
 0x1a2   :  { %v902_v45 = vadd.f32 %v901_v43, %v3879_v37 }
 0x1a3   :  { %v3891_v48 = vpop.f32.mrb[10].mxu0  ;;  %v985_v49 = vsel %vm884_vm1, %v950_v42, 0.0 }
 0x1a4   :  { %983 = vadd.xlane.f32.xlu1 %v982_v40  ;;  %903 = vadd.xlane.f32.xlu0 %v902_v45  ;;  %v3894_v32 = vpop.f32.mrb[11].mxu0  ;;  %v986_v54 = vadd.f32 %v985_v49, %v949_v46  ;;  %v951_v58 = vmul.f32 %v3891_v48, %v3891_v48 }
 0x1a5   :  { %v952_v55 = vmul.f32 %v3894_v32, %v3894_v32  ;;  %v905_v56 = vsel %vm884_vm1, %v3894_v32, 0.0 }
 0x1a6   :  { %v906_v57 = vadd.f32 %v905_v56, %v3891_v48 }
 0x1a7   :  { %v3903_v47 = vpop.f32.mrb[12].mxu0  ;;  %v989_v59 = vsel %vm884_vm1, %v952_v55, 0.0 }
 0x1a8   :  { %987 = vadd.xlane.f32.xlu0 %v986_v54  ;;  %907 = vadd.xlane.f32.xlu1 %v906_v57  ;;  %v3906_v60 = vpop.f32.mrb[13].mxu0  ;;  %v990_v61 = vadd.f32 %v989_v59, %v951_v58  ;;  %v953_v1 = vmul.f32 %v3903_v47, %v3903_v47 }
 0x1a9   :  { %v954_v62 = vmul.f32 %v3906_v60, %v3906_v60  ;;  %v909_v63 = vsel %vm884_vm1, %v3906_v60, 0.0 }
 0x1aa   :  { %v910_v0 = vadd.f32 %v909_v63, %v3903_v47 }
 0x1ab   :  { %v3915_v2 = vpop.f32.mrb[14].mxu0  ;;  %v993_v3 = vsel %vm884_vm1, %v954_v62, 0.0 }
 0x1ac   :  { %991 = vadd.xlane.f32.xlu1 %v990_v61  ;;  %911 = vadd.xlane.f32.xlu0 %v910_v0  ;;  %v3918_v4 = vpop.f32.mrb[15].mxu0  ;;  %v994_v5 = vadd.f32 %v993_v3, %v953_v1  ;;  %v955_v50 = vmul.f32 %v3915_v2, %v3915_v2 }
 0x1ad   :  { %v956_v6 = vmul.f32 %v3918_v4, %v3918_v4  ;;  %v913_v7 = vsel %vm884_vm1, %v3918_v4, 0.0 }
 0x1ae   :  { %v914_v8 = vadd.f32 %v913_v7, %v3915_v2 }
 0x1af   :  { %v3927_v9 = vpop.f32.mrb[16].mxu0  ;;  %v997_v10 = vsel %vm884_vm1, %v956_v6, 0.0 }
 0x1b0   :  { %995 = vadd.xlane.f32.xlu0 %v994_v5  ;;  %915 = vadd.xlane.f32.xlu1 %v914_v8  ;;  %v3930_v13 = vpop.f32.mrb[17].mxu0  ;;  %v998_v41 = vadd.f32 %v997_v10, %v955_v50  ;;  %v957_v17 = vmul.f32 %v3927_v9, %v3927_v9 }
 0x1b1   :  { %v958_v14 = vmul.f32 %v3930_v13, %v3930_v13  ;;  %v917_v15 = vsel %vm884_vm1, %v3930_v13, 0.0 }
 0x1b2   :  { %v918_v16 = vadd.f32 %v917_v15, %v3927_v9 }
 0x1b3   :  { %v3939_v18 = vpop.f32.mrb[18].mxu0  ;;  %v1001_v51 = vsel %vm884_vm1, %v958_v14, 0.0 }
 0x1b4   :  { %999 = vadd.xlane.f32.xlu1 %v998_v41  ;;  %919 = vadd.xlane.f32.xlu0 %v918_v16  ;;  %v3942_v19 = vpop.f32.mrb[19].mxu0  ;;  %v1002_v20 = vadd.f32 %v1001_v51, %v957_v17  ;;  %v959_v25 = vmul.f32 %v3939_v18, %v3939_v18 }
 0x1b5   :  { %v960_v21 = vmul.f32 %v3942_v19, %v3942_v19  ;;  %v921_v23 = vsel %vm884_vm1, %v3942_v19, 0.0 }
 0x1b6   :  { %v922_v24 = vadd.f32 %v921_v23, %v3939_v18 }
 0x1b7   :  { %v3951_v27 = vpop.f32.mrb[20].mxu0  ;;  %v1005_v29 = vsel %vm884_vm1, %v960_v21, 0.0 }
 0x1b8   :  { %1003 = vadd.xlane.f32.xlu0 %v1002_v20  ;;  %923 = vadd.xlane.f32.xlu1 %v922_v24  ;;  %v3954_v31 = vpop.f32.mrb[21].mxu0  ;;  %v1006_v33 = vadd.f32 %v1005_v29, %v959_v25  ;;  %v961_v38 = vmul.f32 %v3951_v27, %v3951_v27 }
 0x1b9   :  { %v962_v34 = vmul.f32 %v3954_v31, %v3954_v31  ;;  %v925_v35 = vsel %vm884_vm1, %v3954_v31, 0.0 }
 0x1ba   :  { %v926_v36 = vadd.f32 %v925_v35, %v3951_v27 }
 0x1bb   :  { %v3963_v40 = vpop.f32.mrb[22].mxu0  ;;  %v1009_v42 = vsel %vm884_vm1, %v962_v34, 0.0 }
 0x1bc   :  { %1007 = vadd.xlane.f32.xlu1 %v1006_v33  ;;  %927 = vadd.xlane.f32.xlu0 %v926_v36  ;;  %v3966_v43 = vpop.f32.mrb[23].mxu0  ;;  %v1010_v45 = vadd.f32 %v1009_v42, %v961_v38  ;;  %v963_v55 = vmul.f32 %v3963_v40, %v3963_v40 }
 0x1bd   :  { %v964_v46 = vmul.f32 %v3966_v43, %v3966_v43  ;;  %v929_v49 = vsel %vm884_vm1, %v3966_v43, 0.0 }
 0x1be   :  { %v930_v54 = vadd.f32 %v929_v49, %v3963_v40 }
 0x1bf   :  { %v3975_v56 = vpop.f32.mrb[24].mxu0  ;;  %v1013_v57 = vsel %vm884_vm1, %v964_v46, 0.0 }
 0x1c0   :  { %1011 = vadd.xlane.f32.xlu0 %v1010_v45  ;;  %931 = vadd.xlane.f32.xlu1 %v930_v54  ;;  %v3978_v58 = vpop.f32.mrb[25].mxu0  ;;  %v1014_v59 = vadd.f32 %v1013_v57, %v963_v55  ;;  %v965_v0 = vmul.f32 %v3975_v56, %v3975_v56 }
 0x1c1   :  { %v966_v61 = vmul.f32 %v3978_v58, %v3978_v58  ;;  %v933_v62 = vsel %vm884_vm1, %v3978_v58, 0.0 }
 0x1c2   :  { %v934_v63 = vadd.f32 %v933_v62, %v3975_v56 }
 0x1c3   :  { %v3987_v1 = vpop.f32.mrb[26].mxu0  ;;  %v1017_v3 = vsel %vm884_vm1, %v966_v61, 0.0 }
 0x1c4   :  { %1015 = vadd.xlane.f32.xlu1 %v1014_v59  ;;  %935 = vadd.xlane.f32.xlu0 %v934_v63  ;;  %v3990_v5 = vpop.f32.mrb[27].mxu0  ;;  %v1018_v6 = vadd.f32 %v1017_v3, %v965_v0  ;;  %v967_v10 = vmul.f32 %v3987_v1, %v3987_v1  ;;  %v1081_v63 = vld [vmem:[%s5262_s5] sm:$0xff] }
 0x1c5   :  { %v968_v7 = vmul.f32 %v3990_v5, %v3990_v5  ;;  %v937_v8 = vsel %vm884_vm1, %v3990_v5, 0.0 }
 0x1c6   :  { %v938_v50 = vadd.f32 %v937_v8, %v3987_v1 }
 0x1c7   :  { %v1021_v41 = vsel %vm884_vm1, %v968_v7, 0.0 }
 0x1c8   :  { %1019 = vadd.xlane.f32.xlu0 %v1018_v6  ;;  %939 = vadd.xlane.f32.xlu1 %v938_v50  ;;  %v1022_v14 = vadd.f32 %v1021_v41, %v967_v10 }
 0x1cc   :  { %1023 = vadd.xlane.f32.xlu1 %v1022_v14  ;;  %v1082_v14 = vld [vmem:[%s5262_s5 + $0x8] sm:$0xff] }
 0x221   :  { %v888_v15 = vpop.xlane.xlu0 %887 }
 0x222   :  { %v1025_v16 = vmul.f32 0.0051020407, %v888_v15 }
 0x223   :  { %v972_v17 = vpop.xlane.xlu1 %971 }
 0x224   :  { %v1053_v51 = vmul.f32 %v1025_v16, %v1025_v16  ;;  %v1039_v20 = vmul.f32 0.0051020407, %v972_v17 }
 0x225   :  { %v892_v21 = vpop.xlane.xlu0 %891 }
 0x226   :  { %v1067_v23 = vsub.f32 %v1039_v20, %v1053_v51  ;;  %v1026_v24 = vmul.f32 0.0051020407, %v892_v21 }
 0x227   :  { %v976_v25 = vpop.xlane.xlu1 %975 }
 0x228   :  { %v1095_v26 = vadd.f32 1e-05, %v1067_v23  ;;  %v1054_v29 = vmul.f32 %v1026_v24, %v1026_v24  ;;  %v1040_v33 = vmul.f32 0.0051020407, %v976_v25 }
 0x229   :  { %v896_v34 = vpop.xlane.xlu0 %895 }
 0x22a   :  { %2877 = vrsqrt.f32 %v1095_v26  ;;  %v1068_v35 = vsub.f32 %v1040_v33, %v1054_v29  ;;  %v4000_v36 = vmul.f32 0.0051020407, %v896_v34  ;;  %v1137_v34 = vld [vmem:[%s5263_s6] sm:$0xff] }
 0x22c   :  { %v1096_v38 = vadd.f32 1e-05, %v1068_v35  ;;  %v1055_v46 = vmul.f32 %v4000_v36, %v4000_v36 }
 0x22d   :  { %v980_v42 = vpop.xlane.xlu0 %979  ;;  %v900_v45 = vpop.xlane.xlu1 %899 }
 0x22e   :  { %2879 = vrsqrt.f32 %v1096_v38  ;;  %v1041_v49 = vmul.f32 0.0051020407, %v980_v42  ;;  %v4004_v54 = vmul.f32 0.0051020407, %v900_v45 }
 0x230   :  { %v1069_v55 = vsub.f32 %v1041_v49, %v1055_v46  ;;  %v1056_v61 = vmul.f32 %v4004_v54, %v4004_v54 }
 0x231   :  { %v984_v57 = vpop.xlane.xlu1 %983  ;;  %v904_v59 = vpop.xlane.xlu0 %903 }
 0x232   :  { %v1042_v62 = vmul.f32 0.0051020407, %v984_v57  ;;  %v1097_v3 = vadd.f32 1e-05, %v1069_v55  ;;  %v4011_v10 = vmul.f32 0.0051020407, %v904_v59 }
 0x234   :  { %v2878_v0 = vpop.eup %2877  ;;  %v1070_v6 = vsub.f32 %v1042_v62, %v1056_v61  ;;  %2881 = vrsqrt.f32 %v1097_v3  ;;  %v1057_v26 = vmul.f32 %v4011_v10, %v4011_v10 }
 0x235   :  { %v988_v7 = vpop.xlane.xlu0 %987  ;;  %v908_v8 = vpop.xlane.xlu1 %907  ;;  %v1123_v50 = vmul.f32 %v2878_v0, %v1081_v63 }
 0x236   :  { %v4013_v41 = vmul.f32 0.0051020407, %v908_v8  ;;  %v1098_v17 = vadd.f32 1e-05, %v1070_v6  ;;  %v1043_v51 = vmul.f32 0.0051020407, %v988_v7 }
 0x237   :  { %1181 = vperm.xlu0 %2875, %v1123_v50   ;;  %v1151_v25 = vmul.f32 %v1123_v50, %v1025_v16  ;;  %v1138_v16 = vld [vmem:[%s5263_s6 + $0x8] sm:$0xff]  ;;  %v1083_v50 = vld [vmem:[%s5262_s5 + $0x10] sm:$0xff] }
 0x238   :  { %v2880_v15 = vpop.eup %2879  ;;  %v1058_v29 = vmul.f32 %v4013_v41, %v4013_v41  ;;  %2883 = vrsqrt.f32 %v1098_v17  ;;  %v1071_v35 = vsub.f32 %v1043_v51, %v1057_v26 }
 0x239   :  { %v992_v20 = vpop.xlane.xlu1 %991  ;;  %v912_v21 = vpop.xlane.xlu0 %911  ;;  %v1124_v23 = vmul.f32 %v2880_v15, %v1082_v14  ;;  %v1165_v46 = vsub.f32 %v1137_v34, %v1151_v25 }
 0x23a   :  { %v1044_v33 = vmul.f32 0.0051020407, %v992_v20  ;;  %v4028_v57 = vmul.f32 0.0051020407, %v912_v21  ;;  %v1099_v61 = vadd.f32 1e-05, %v1071_v35 }
 0x23b   :  { %1186 = vperm.xlu1 %2876, %v1124_v23   ;;  %v1152_v49 = vmul.f32 %v1124_v23, %v1026_v24  ;;  %v1084_v21 = vld [vmem:[%s5262_s5 + $0x18] sm:$0xff]  ;;  %v1086_v35 = vld [vmem:[%s5262_s5 + $0x28] sm:$0xff] }
 0x23c   :  { %v1072_v38 = vsub.f32 %v1044_v33, %v1058_v29  ;;  %v1059_v7 = vmul.f32 %v4028_v57, %v4028_v57 }
 0x23d   :  { %v996_v42 = vpop.xlane.xlu0 %995  ;;  %v916_v45 = vpop.xlane.xlu1 %915  ;;  %v1166_v3 = vsub.f32 %v1138_v16, %v1152_v49 }
 0x23e   :  { %v1100_v55 = vadd.f32 1e-05, %v1072_v38  ;;  %v4030_v59 = vmul.f32 0.0051020407, %v916_v45  ;;  %v1045_v62 = vmul.f32 0.0051020407, %v996_v42  ;;  %v2882_v6 = vpop.eup %2881 }
 0x23f   :  { %1307 = vperm.xlu1 %2876, %v1165_v46   ;;  %v1125_v20 = vmul.f32 %v2882_v6, %v1083_v50  ;;  %v1140_v50 = vld [vmem:[%s5263_s6 + $0x18] sm:$0xff] }
 0x240   :  { %2885 = vrsqrt.f32 %v1100_v55  ;;  %v1060_v8 = vmul.f32 %v4030_v59, %v4030_v59  ;;  %v1073_v14 = vsub.f32 %v1045_v62, %v1059_v7  ;;  %v1139_v62 = vld [vmem:[%s5263_s6 + $0x10] sm:$0xff] }
 0x241   :  { %v1000_v63 = vpop.xlane.xlu1 %999  ;;  %v920_v0 = vpop.xlane.xlu0 %919  ;;  %2887 = vrsqrt.f32 %v1099_v61  ;;  %v1153_v46 = vmul.f32 %v1125_v20, %v4000_v36  ;;  %v1142_v36 = vld [vmem:[%s5263_s6 + $0x28] sm:$0xff] }
 0x242   :  { %v1046_v24 = vmul.f32 0.0051020407, %v1000_v63  ;;  %v2884_v23 = vpop.eup %2883  ;;  %v4042_v26 = vmul.f32 0.0051020407, %v920_v0  ;;  %v1101_v33 = vadd.f32 1e-05, %v1073_v14 }
 0x243   :  { %1312 = vperm.xlu1 %2876, %v1166_v3   ;;  %v1126_v45 = vmul.f32 %v2884_v23, %v1084_v21 }
 0x244   :  { %v1074_v15 = vsub.f32 %v1046_v24, %v1060_v8  ;;  %v1061_v49 = vmul.f32 %v4042_v26, %v4042_v26  ;;  %v1167_v8 = vsub.f32 %v1139_v62, %v1153_v46  ;;  %v1144_v62 = vld [vmem:[%s5263_s6 + $0x38] sm:$0xff] }
 0x245   :  { %v1004_v17 = vpop.xlane.xlu0 %1003  ;;  %v924_v51 = vpop.xlane.xlu1 %923  ;;  %v1154_v14 = vmul.f32 %v1126_v45, %v4004_v54 }
 0x246   :  { %v1102_v25 = vadd.f32 1e-05, %v1074_v15  ;;  %v4044_v29 = vmul.f32 0.0051020407, %v924_v51  ;;  %v1047_v34 = vmul.f32 0.0051020407, %v1004_v17 }
 0x247   :  { %1191 = vperm.xlu1 %2876, %v1125_v20   ;;  %v1085_v15 = vld [vmem:[%s5262_s5 + $0x20] sm:$0xff] }
 0x248   :  { %2889 = vrsqrt.f32 %v1102_v25  ;;  %v1062_v55 = vmul.f32 %v4044_v29, %v4044_v29  ;;  %v1075_v0 = vsub.f32 %v1047_v34, %v1061_v49 }
 0x249   :  { %v1008_v38 = vpop.xlane.xlu1 %1007  ;;  %v928_v42 = vpop.xlane.xlu0 %927  ;;  %2891 = vrsqrt.f32 %v1101_v33  ;;  %v1088_v33 = vld [vmem:[%s5262_s5 + $0x38] sm:$0xff] }
 0x24a   :  { %v2886_v16 = vpop.eup %2885  ;;  %v1048_v61 = vmul.f32 0.0051020407, %v1008_v38  ;;  %v4068_v20 = vmul.f32 0.0051020407, %v928_v42  ;;  %v1103_v25 = vadd.f32 1e-05, %v1075_v0 }
 0x24b   :  { %1196 = vperm.xlu1 %2876, %v1126_v45   ;;  %v1128_v63 = vmul.f32 %v2886_v16, %v1086_v35  ;;  %v2888_v17 = vpop.eup %2887  ;;  %v1168_v35 = vsub.f32 %v1140_v50, %v1154_v14 }
 0x24c   :  { %v1076_v3 = vsub.f32 %v1048_v61, %v1062_v55  ;;  %v1127_v38 = vmul.f32 %v2888_v17, %v1085_v15  ;;  %v1063_v42 = vmul.f32 %v4068_v20, %v4068_v20 }
 0x24d   :  { %v1012_v6 = vpop.xlane.xlu0 %1011  ;;  %v932_v7 = vpop.xlane.xlu1 %931  ;;  %1206 = vperm.xlu0 %2875, %v1128_v63   ;;  %v1156_v24 = vmul.f32 %v1128_v63, %v4013_v41 }
 0x24e   :  { %v1104_v51 = vadd.f32 1e-05, %v1076_v3  ;;  %v4070_v21 = vmul.f32 0.0051020407, %v932_v7  ;;  %v1049_v41 = vmul.f32 0.0051020407, %v1012_v6  ;;  %v1155_v6 = vmul.f32 %v1127_v38, %v4011_v10 }
 0x24f   :  { %1317 = vperm.xlu1 %2876, %v1167_v8   ;;  %v1170_v23 = vsub.f32 %v1142_v36, %v1156_v24  ;;  %v1141_v36 = vld [vmem:[%s5263_s6 + $0x20] sm:$0xff]  ;;  %v1087_v7 = vld [vmem:[%s5262_s5 + $0x30] sm:$0xff] }
 0x250   :  { %2893 = vrsqrt.f32 %v1104_v51  ;;  %v1064_v46 = vmul.f32 %v4070_v21, %v4070_v21  ;;  %v1077_v55 = vsub.f32 %v1049_v41, %v1063_v42  ;;  %v1090_v51 = vld [vmem:[%s5262_s5 + $0x48] sm:$0xff] }
 0x251   :  { %v1016_v54 = vpop.xlane.xlu1 %1015  ;;  %1332 = vperm.xlu0 %2875, %v1170_v23   ;;  %v936_v34 = vpop.xlane.xlu0 %935  ;;  %2895 = vrsqrt.f32 %v1103_v25  ;;  %v1169_v23 = vsub.f32 %v1141_v36, %v1155_v6  ;;  %v1146_v42 = vld [vmem:[%s5263_s6 + $0x48] sm:$0xff] }
 0x252   :  { %v2890_v45 = vpop.eup %2889  ;;  %v1050_v16 = vmul.f32 0.0051020407, %v1016_v54  ;;  %v4090_v50 = vmul.f32 0.0051020407, %v936_v34  ;;  %v1105_v17 = vadd.f32 1e-05, %v1077_v55 }
 0x253   :  { %1322 = vperm.xlu1 %2876, %v1168_v35   ;;  %v1130_v49 = vmul.f32 %v2890_v45, %v1088_v33  ;;  %v2892_v8 = vpop.eup %2891 }
 0x254   :  { %v1078_v61 = vsub.f32 %v1050_v16, %v1064_v46  ;;  %v1129_v25 = vmul.f32 %v2892_v8, %v1087_v7  ;;  %v1065_v33 = vmul.f32 %v4090_v50, %v4090_v50  ;;  %v1148_v7 = vld [vmem:[%s5263_s6 + $0x58] sm:$0xff] }
 0x255   :  { %1216 = vperm.xlu0 %2875, %v1130_v49   ;;  %v1020_v63 = vpop.xlane.xlu0 %1019  ;;  %v940_v0 = vpop.xlane.xlu1 %939  ;;  %v1158_v3 = vmul.f32 %v1130_v49, %v4030_v59 }
 0x256   :  { %v1106_v24 = vadd.f32 1e-05, %v1078_v61  ;;  %v1038_v14 = vmul.f32 0.0051020407, %v940_v0  ;;  %v1051_v59 = vmul.f32 0.0051020407, %v1020_v63  ;;  %v1157_v16 = vmul.f32 %v1129_v25, %v4028_v57 }
 0x257   :  { %1201 = vperm.xlu1 %2876, %v1127_v38   ;;  %v1172_v15 = vsub.f32 %v1144_v62, %v1158_v3  ;;  %v1143_v61 = vld [vmem:[%s5263_s6 + $0x30] sm:$0xff]  ;;  %v1089_v62 = vld [vmem:[%s5262_s5 + $0x40] sm:$0xff] }
 0x258   :  { %2897 = vrsqrt.f32 %v1106_v24  ;;  %v1066_v54 = vmul.f32 %v1038_v14, %v1038_v14  ;;  %v1079_v38 = vsub.f32 %v1051_v59, %v1065_v33  ;;  %v1171_v57 = vsub.f32 %v1143_v61, %v1157_v16  ;;  %v1091_v59 = vld [vmem:[%s5262_s5 + $0x50] sm:$0xff]  ;;  %v1277_v61 = vld [vmem:[%s5264_s1] sm:$0xff] }
 0x259   :  { %1342 = vperm.xlu0 %2875, %v1172_v15   ;;  %v1024_v10 = vpop.xlane.xlu1 %1023  ;;  %2899 = vrsqrt.f32 %v1105_v17  ;;  %v1145_v17 = vld [vmem:[%s5263_s6 + $0x40] sm:$0xff] }
 0x25a   :  { %v2894_v41 = vpop.eup %2893  ;;  %v1052_v34 = vmul.f32 0.0051020407, %v1024_v10  ;;  %v1107_v0 = vadd.f32 1e-05, %v1079_v38  ;;  %v1094_v10 = vld [vmem:[%s5262_s5 + $0x68] sm:$0xff]  ;;  %v1093_v38 = vld [vmem:[%s5262_s5 + $0x60] sm:$0xff] }
 0x25b   :  { %1327 = vperm.xlu1 %2876, %v1169_v23   ;;  %v1132_v35 = vmul.f32 %v2894_v41, %v1090_v51  ;;  %v2896_v49 = vpop.eup %2895  ;;  %v1150_v41 = vld [vmem:[%s5263_s6 + $0x68] sm:$0xff] }
 0x25c   :  { %v1080_v45 = vsub.f32 %v1052_v34, %v1066_v54  ;;  %v1131_v3 = vmul.f32 %v2896_v49, %v1089_v62  ;;  %v2906_v49 = vmov 0.0  }
 0x25d   :  { %1226 = vperm.xlu0 %2875, %v1132_v35   ;;  %v1160_v46 = vmul.f32 %v1132_v35, %v4044_v29  ;;  %v1092_v29 = vld [vmem:[%s5262_s5 + $0x58] sm:$0xff]  ;;  %v1147_v35 = vld [vmem:[%s5263_s6 + $0x50] sm:$0xff]  ;;  %1922 = vmatprep.mubr.f32.mxu1 %v2906_v49 }
 0x25e   :  { %v1108_v55 = vadd.f32 1e-05, %v1080_v45  ;;  %v1159_v24 = vmul.f32 %v1131_v3, %v4042_v26  ;;  %1832 = vmatprep.mubr.f32.mxu0 %v2906_v49 }
 0x25f   :  { %1211 = vperm.xlu1 %2876, %v1129_v25   ;;  %v1174_v63 = vsub.f32 %v1146_v42, %v1160_v46 }
 0x260   :  { %2901 = vrsqrt.f32 %v1108_v55  ;;  %v1173_v23 = vsub.f32 %v1145_v17, %v1159_v24 }
 0x261   :  { %1352 = vperm.xlu0 %2875, %v1174_v63   ;;  %2903 = vrsqrt.f32 %v1107_v0  ;;  %v1279_v0 = vld [vmem:[%s5264_s1 + $0x10] sm:$0xff] }
 0x262   :  { %v2898_v36 = vpop.eup %2897 }
 0x263   :  { %1337 = vperm.xlu1 %2876, %v1171_v57   ;;  %v1134_v6 = vmul.f32 %v2898_v36, %v1092_v29  ;;  %v2900_v15 = vpop.eup %2899  ;;  %v1280_v29 = vld [vmem:[%s5264_s1 + $0x18] sm:$0xff] }
 0x265   :  { %1236 = vperm.xlu0 %2875, %v1134_v6   ;;  %v1162_v8 = vmul.f32 %v1134_v6, %v4070_v21  ;;  %v1133_v21 = vmul.f32 %v2900_v15, %v1091_v59 }
 0x267   :  { %1221 = vperm.xlu1 %2876, %v1131_v3   ;;  %v1176_v51 = vsub.f32 %v1148_v7, %v1162_v8  ;;  %v1161_v54 = vmul.f32 %v1133_v21, %v4068_v20  ;;  %v1149_v20 = vld [vmem:[%s5263_s6 + $0x60] sm:$0xff] }
 0x269   :  { %1362 = vperm.xlu0 %2875, %v1176_v51   ;;  %v1175_v42 = vsub.f32 %v1147_v35, %v1161_v54  ;;  %v1283_v54 = vld [vmem:[%s5264_s1 + $0x30] sm:$0xff] }
 0x26a   :  { %v2902_v25 = vpop.eup %2901 }
 0x26b   :  { %1347 = vperm.xlu1 %2876, %v1173_v23   ;;  %v1136_v26 = vmul.f32 %v2902_v25, %v1094_v10  ;;  %v2904_v34 = vpop.eup %2903 }
 0x26c   :  { %v1135_v46 = vmul.f32 %v2904_v34, %v1093_v38  ;;  %v1284_v34 = vld [vmem:[%s5264_s1 + $0x38] sm:$0xff] }
 0x26d   :  { %1246 = vperm.xlu0 %2875, %v1136_v26   ;;  %v1164_v33 = vmul.f32 %v1136_v26, %v1038_v14 }
 0x26e   :  { %v1163_v16 = vmul.f32 %v1135_v46, %v4090_v50  ;;  %v1278_v50 = vld [vmem:[%s5264_s1 + $0x8] sm:$0xff] }
 0x26f   :  { %1231 = vperm.xlu1 %2876, %v1133_v21   ;;  %v1178_v45 = vsub.f32 %v1150_v41, %v1164_v33 }
 0x270   :  { %v1177_v14 = vsub.f32 %v1149_v20, %v1163_v16 }
 0x271   :  { %1372 = vperm.xlu0 %2875, %v1178_v45  }
 0x273   :  { %1357 = vperm.xlu1 %2876, %v1175_v42  }
 0x277   :  { %1241 = vperm.xlu1 %2876, %v1135_v46  }
 0x27b   :  { %1367 = vperm.xlu1 %2876, %v1177_v14  }
 0x2b6   :  { %v1182_v63 = vpop.permute.xlu0 %1181 }
 0x2b7   :  { %v1249_v36 = vmul.f32 %v1182_v63, %v3832_v11  ;;  %v1250_v6 = vmul.f32 %v1182_v63, %v3834_v12 }
 0x2ba   :  { %v1187_v55 = vpop.permute.xlu1 %1186 }
 0x2bb   :  { %v1251_v8 = vmul.f32 %v1187_v55, %v3843_v44  ;;  %v1252_v24 = vmul.f32 %v1187_v55, %v3846_v53  ;;  %v1281_v44 = vld [vmem:[%s5264_s1 + $0x20] sm:$0xff]  ;;  %v1282_v53 = vld [vmem:[%s5264_s1 + $0x28] sm:$0xff] }
 0x2be   :  { %v1308_v62 = vpop.permute.xlu1 %1307 }
 0x2bf   :  { %v1375_v57 = vadd.f32 %v1308_v62, %v1277_v61  ;;  %v1376_v3 = vadd.f32 %v1308_v62, %v1278_v50 }
 0x2c1   :  { %v1403_v59 = vadd.f32 %v1375_v57, %v1249_v36  ;;  %v1404_v51 = vadd.f32 %v1376_v3, %v1250_v6  ;;  %v1286_v36 = vld [vmem:[%s5264_s1 + $0x48] sm:$0xff] }
 0x2c2   :  { %v1313_v7 = vpop.permute.xlu1 %1312 }
 0x2c3   :  { %v1377_v15 = vadd.f32 %v1313_v7, %v1279_v0  ;;  %v1378_v17 = vadd.f32 %v1313_v7, %v1280_v29  ;;  %v1287_v29 = vld [vmem:[%s5264_s1 + $0x50] sm:$0xff] }
 0x2c5   :  { %v1405_v10 = vadd.f32 %v1377_v15, %v1251_v8  ;;  %v1406_v23 = vadd.f32 %v1378_v17, %v1252_v24 }
 0x2c6   :  { %v1192_v21 = vpop.permute.xlu1 %1191 }
 0x2c7   :  { %v2777_v25 = vpack.c.bf16 %v1405_v10, %v1403_v59  ;;  %v2775_v26 = vpack.c.bf16 %v1406_v23, %v1404_v51  ;;  %v1253_v45 = vmul.f32 %v1192_v21, %v3855_v52  ;;  %v1254_v42 = vmul.f32 %v1192_v21, %v3858_v22  ;;  %v1288_v52 = vld [vmem:[%s5264_s1 + $0x58] sm:$0xff] }
 0x2c9   :  { %2776 = vmatprep.subr.bf16.mxu0 %v2775_v26  ;;  %2803 = vmatprep.subr.bf16.mxu1 %v2775_v26 }
 0x2ca   :  { %2778 = vmatpush1.bf16.msra.mxu0 %v2777_v25  ;;  %2810 = vmatpush1.bf16.msra.mxu1 %v2777_v25  ;;  %v1197_v11 = vpop.permute.xlu1 %1196 }
 0x2cb   :  { %v1255_v16 = vmul.f32 %v1197_v11, %v3867_v28  ;;  %v1256_v20 = vmul.f32 %v1197_v11, %v3870_v30  ;;  %v1285_v30 = vld [vmem:[%s5264_s1 + $0x40] sm:$0xff] }
 0x2cc   :  { %v1207_v12 = vpop.permute.xlu0 %1206 }
 0x2cd   :  { %v1259_v8 = vmul.f32 %v1207_v12, %v3891_v48  ;;  %v1260_v24 = vmul.f32 %v1207_v12, %v3894_v32  ;;  %v1291_v48 = vld [vmem:[%s5264_s1 + $0x70] sm:$0xff]  ;;  %v1292_v32 = vld [vmem:[%s5264_s1 + $0x78] sm:$0xff] }
 0x2ce   :  { %v1318_v41 = vpop.permute.xlu1 %1317 }
 0x2cf   :  { %v1379_v35 = vadd.f32 %v1318_v41, %v1281_v44  ;;  %v1380_v38 = vadd.f32 %v1318_v41, %v1282_v53  ;;  %v1290_v41 = vld [vmem:[%s5264_s1 + $0x68] sm:$0xff] }
 0x2d0   :  { %v1333_v33 = vpop.permute.xlu0 %1332 }
 0x2d1   :  { %v1407_v50 = vadd.f32 %v1379_v35, %v1253_v45  ;;  %v1408_v62 = vadd.f32 %v1380_v38, %v1254_v42  ;;  %v1385_v6 = vadd.f32 %v1333_v33, %v1287_v29  ;;  %v1386_v7 = vadd.f32 %v1333_v33, %v1288_v52 }
 0x2d2   :  { %v1323_v46 = vpop.permute.xlu1 %1322 }
 0x2d3   :  { %v1381_v14 = vadd.f32 %v1323_v46, %v1283_v54  ;;  %v1382_v55 = vadd.f32 %v1323_v46, %v1284_v34  ;;  %v1413_v21 = vadd.f32 %v1385_v6, %v1259_v8  ;;  %v1414_v25 = vadd.f32 %v1386_v7, %v1260_v24 }
 0x2d4   :  { %v1217_v61 = vpop.permute.xlu0 %1216 }
 0x2d5   :  { %v1409_v63 = vadd.f32 %v1381_v14, %v1255_v16  ;;  %v1410_v0 = vadd.f32 %v1382_v55, %v1256_v20  ;;  %v1263_v34 = vmul.f32 %v1217_v61, %v3915_v2  ;;  %v1264_v35 = vmul.f32 %v1217_v61, %v3918_v4  ;;  %v1295_v2 = vld [vmem:[%s5264_s1 + $0x90] sm:$0xff]  ;;  %v1296_v4 = vld [vmem:[%s5264_s1 + $0x98] sm:$0xff] }
 0x2d6   :  { %v1202_v22 = vpop.permute.xlu1 %1201 }
 0x2d7   :  { %v2781_v57 = vpack.c.bf16 %v1409_v63, %v1407_v50  ;;  %v2779_v28 = vpack.c.bf16 %v1410_v0, %v1408_v62  ;;  %v1257_v17 = vmul.f32 %v1202_v22, %v3879_v37  ;;  %v1258_v59 = vmul.f32 %v1202_v22, %v3882_v39  ;;  %v1289_v39 = vld [vmem:[%s5264_s1 + $0x60] sm:$0xff]  ;;  %v1294_v0 = vld [vmem:[%s5264_s1 + $0x88] sm:$0xff] }
 0x2d8   :  { %v1343_v3 = vpop.permute.xlu0 %1342 }
 0x2d9   :  { %2780 = vmatprep.subr.bf16.mxu0 %v2779_v28  ;;  %2804 = vmatprep.subr.bf16.mxu1 %v2779_v28  ;;  %v1389_v33 = vadd.f32 %v1343_v3, %v1291_v48  ;;  %v1390_v54 = vadd.f32 %v1343_v3, %v1292_v32 }
 0x2da   :  { %2782 = vmatpush1.bf16.msra.mxu0 %v2781_v57  ;;  %2811 = vmatpush1.bf16.msra.mxu1 %v2781_v57  ;;  %v1328_v15 = vpop.permute.xlu1 %1327 }
 0x2db   :  { %v1383_v51 = vadd.f32 %v1328_v15, %v1285_v30  ;;  %v1384_v10 = vadd.f32 %v1328_v15, %v1286_v36  ;;  %v1417_v14 = vadd.f32 %v1389_v33, %v1263_v34  ;;  %v1418_v55 = vadd.f32 %v1390_v54, %v1264_v35  ;;  %v1303_v54 = vld [vmem:[%s5264_s1 + $0xd0] sm:$0xff] }
 0x2dc   :  { %v1227_v23 = vpop.permute.xlu0 %1226 }
 0x2dd   :  { %v1411_v26 = vadd.f32 %v1383_v51, %v1257_v17  ;;  %v1412_v11 = vadd.f32 %v1384_v10, %v1258_v59  ;;  %v1267_v22 = vmul.f32 %v1227_v23, %v3939_v18  ;;  %v1268_v57 = vmul.f32 %v1227_v23, %v3942_v19  ;;  %v1299_v18 = vld [vmem:[%s5264_s1 + $0xb0] sm:$0xff]  ;;  %v1300_v19 = vld [vmem:[%s5264_s1 + $0xb8] sm:$0xff]  ;;  %v1298_v23 = vld [vmem:[%s5264_s1 + $0xa8] sm:$0xff] }
 0x2de   :  { %v1212_v12 = vpop.permute.xlu1 %1211 }
 0x2df   :  { %v2785_v44 = vpack.c.bf16 %v1413_v21, %v1411_v26  ;;  %v2783_v37 = vpack.c.bf16 %v1414_v25, %v1412_v11  ;;  %v1261_v45 = vmul.f32 %v1212_v12, %v3903_v47  ;;  %v1262_v42 = vmul.f32 %v1212_v12, %v3906_v60  ;;  %v1293_v60 = vld [vmem:[%s5264_s1 + $0x80] sm:$0xff] }
 0x2e0   :  { %v1353_v53 = vpop.permute.xlu0 %1352 }
 0x2e1   :  { %2784 = vmatprep.subr.bf16.mxu0 %v2783_v37  ;;  %2805 = vmatprep.subr.bf16.mxu1 %v2783_v37  ;;  %v1393_v29 = vadd.f32 %v1353_v53, %v1295_v2  ;;  %v1394_v52 = vadd.f32 %v1353_v53, %v1296_v4 }
 0x2e2   :  { %2786 = vmatpush1.bf16.msra.mxu0 %v2785_v44  ;;  %2812 = vmatpush1.bf16.msra.mxu1 %v2785_v44  ;;  %v1338_v38 = vpop.permute.xlu1 %1337 }
 0x2e3   :  { %v1387_v46 = vadd.f32 %v1338_v38, %v1289_v39  ;;  %v1388_v16 = vadd.f32 %v1338_v38, %v1290_v41  ;;  %v1421_v8 = vadd.f32 %v1393_v29, %v1267_v22  ;;  %v1422_v24 = vadd.f32 %v1394_v52, %v1268_v57  ;;  %v1302_v38 = vld [vmem:[%s5264_s1 + $0xc8] sm:$0xff]  ;;  %v1451_v29 = vld [vmem:[%s5265_s4 + $0xa0] sm:$0xff]  ;;  %v1453_v22 = vld [vmem:[%s5265_s4 + $0xb0] sm:$0xff] }
 0x2e4   :  { %v1237_v20 = vpop.permute.xlu0 %1236  ;;  %v1452_v52 = vld [vmem:[%s5265_s4 + $0xa8] sm:$0xff]  ;;  %v1454_v57 = vld [vmem:[%s5265_s4 + $0xb8] sm:$0xff] }
 0x2e5   :  { %v1415_v50 = vadd.f32 %v1387_v46, %v1261_v45  ;;  %v1416_v62 = vadd.f32 %v1388_v16, %v1262_v42  ;;  %v1271_v26 = vmul.f32 %v1237_v20, %v3963_v40  ;;  %v1272_v11 = vmul.f32 %v1237_v20, %v3966_v43  ;;  %v1304_v40 = vld [vmem:[%s5264_s1 + $0xd8] sm:$0xff] }
 0x2e6   :  { %v1222_v61 = vpop.permute.xlu1 %1221 }
 0x2e7   :  { %v2789_v63 = vpack.c.bf16 %v1417_v14, %v1415_v50  ;;  %v2787_v47 = vpack.c.bf16 %v1418_v55, %v1416_v62  ;;  %v1265_v30 = vmul.f32 %v1222_v61, %v3927_v9  ;;  %v1266_v36 = vmul.f32 %v1222_v61, %v3930_v13  ;;  %v1297_v13 = vld [vmem:[%s5264_s1 + $0xa0] sm:$0xff] }
 0x2e8   :  { %v1363_v28 = vpop.permute.xlu0 %1362 }
 0x2e9   :  { %2788 = vmatprep.subr.bf16.mxu0 %v2787_v47  ;;  %2806 = vmatprep.subr.bf16.mxu1 %v2787_v47  ;;  %v1397_v21 = vadd.f32 %v1363_v28, %v1299_v18  ;;  %v1398_v25 = vadd.f32 %v1363_v28, %v1300_v19  ;;  %v1455_v28 = vld [vmem:[%s5265_s4 + $0xc0] sm:$0xff]  ;;  %v1465_v18 = vld [vmem:[%s5265_s4 + $0x110] sm:$0xff]  ;;  %v1466_v19 = vld [vmem:[%s5265_s4 + $0x118] sm:$0xff] }
 0x2ea   :  { %2790 = vmatpush1.bf16.msra.mxu0 %v2789_v63  ;;  %2813 = vmatpush1.bf16.msra.mxu1 %v2789_v63  ;;  %v1348_v3 = vpop.permute.xlu1 %1347 }
 0x2eb   :  { %v1391_v6 = vadd.f32 %v1348_v3, %v1293_v60  ;;  %v1392_v7 = vadd.f32 %v1348_v3, %v1294_v0  ;;  %v1425_v53 = vadd.f32 %v1397_v21, %v1271_v26  ;;  %v1426_v39 = vadd.f32 %v1398_v25, %v1272_v11  ;;  %v1450_v0 = vld [vmem:[%s5265_s4 + $0x98] sm:$0xff]  ;;  %v1456_v3 = vld [vmem:[%s5265_s4 + $0xc8] sm:$0xff]  ;;  %v1433_v21 = vld [vmem:[%s5265_s4 + $0x10] sm:$0xff] }
 0x2ec   :  { %v1247_v9 = vpop.permute.xlu0 %1246  ;;  %v1471_v25 = vld [vmem:[%s5265_s4 + $0x140] sm:$0xff]  ;;  %v1434_v26 = vld [vmem:[%s5265_s4 + $0x18] sm:$0xff]  ;;  %v1472_v11 = vld [vmem:[%s5265_s4 + $0x148] sm:$0xff] }
 0x2ed   :  { %v1419_v15 = vadd.f32 %v1391_v6, %v1265_v30  ;;  %v1420_v17 = vadd.f32 %v1392_v7, %v1266_v36  ;;  %v1275_v46 = vmul.f32 %v1247_v9, %v3987_v1  ;;  %v1276_v16 = vmul.f32 %v1247_v9, %v3990_v5  ;;  %v1446_v1 = vld [vmem:[%s5265_s4 + $0x78] sm:$0xff]  ;;  %v1449_v5 = vld [vmem:[%s5265_s4 + $0x90] sm:$0xff]  ;;  %v1459_v6 = vld [vmem:[%s5265_s4 + $0xe0] sm:$0xff] }
 0x2ee   :  { %v1232_v59 = vpop.permute.xlu1 %1231  ;;  %v1457_v30 = vld [vmem:[%s5265_s4 + $0xd0] sm:$0xff]  ;;  %v1458_v36 = vld [vmem:[%s5265_s4 + $0xd8] sm:$0xff]  ;;  %v1460_v7 = vld [vmem:[%s5265_s4 + $0xe8] sm:$0xff] }
 0x2ef   :  { %v2793_v51 = vpack.c.bf16 %v1421_v8, %v1419_v15  ;;  %v2791_v10 = vpack.c.bf16 %v1422_v24, %v1420_v17  ;;  %v1269_v32 = vmul.f32 %v1232_v59, %v3951_v27  ;;  %v1270_v12 = vmul.f32 %v1232_v59, %v3954_v31  ;;  %v1301_v31 = vld [vmem:[%s5264_s1 + $0xc0] sm:$0xff]  ;;  %v1461_v8 = vld [vmem:[%s5265_s4 + $0xf0] sm:$0xff]  ;;  %v1462_v24 = vld [vmem:[%s5265_s4 + $0xf8] sm:$0xff] }
 0x2f0   :  { %v1373_v43 = vpop.permute.xlu0 %1372  ;;  %v1463_v15 = vld [vmem:[%s5265_s4 + $0x100] sm:$0xff]  ;;  %v1464_v17 = vld [vmem:[%s5265_s4 + $0x108] sm:$0xff]  ;;  %v1469_v9 = vld [vmem:[%s5265_s4 + $0x130] sm:$0xff] }
 0x2f1   :  { %2792 = vmatprep.subr.bf16.mxu0 %v2791_v10  ;;  %2807 = vmatprep.subr.bf16.mxu1 %v2791_v10  ;;  %v1401_v45 = vadd.f32 %v1373_v43, %v1303_v54  ;;  %v1402_v42 = vadd.f32 %v1373_v43, %v1304_v40  ;;  %v1467_v59 = vld [vmem:[%s5265_s4 + $0x120] sm:$0xff]  ;;  %v1477_v54 = vld [vmem:[%s5265_s4 + $0x170] sm:$0xff]  ;;  %v1440_v40 = vld [vmem:[%s5265_s4 + $0x48] sm:$0xff] }
 0x2f2   :  { %2794 = vmatpush1.bf16.msra.mxu0 %v2793_v51  ;;  %2814 = vmatpush1.bf16.msra.mxu1 %v2793_v51  ;;  %v1358_v48 = vpop.permute.xlu1 %1357  ;;  %v1468_v51 = vld [vmem:[%s5265_s4 + $0x128] sm:$0xff]  ;;  %v1431_v10 = vld [vmem:[%s5265_s4] sm:$0xff]  ;;  %v1478_v43 = vld [vmem:[%s5265_s4 + $0x178] sm:$0xff] }
 0x2f3   :  { %v1395_v44 = vadd.f32 %v1358_v48, %v1297_v13  ;;  %v1396_v37 = vadd.f32 %v1358_v48, %v1298_v23  ;;  %v1429_v2 = vadd.f32 %v1401_v45, %v1275_v46  ;;  %v1430_v4 = vadd.f32 %v1402_v42, %v1276_v16  ;;  %v1432_v13 = vld [vmem:[%s5265_s4 + $0x8] sm:$0xff]  ;;  %v1470_v23 = vld [vmem:[%s5265_s4 + $0x138] sm:$0xff]  ;;  %v1435_v48 = vld [vmem:[%s5265_s4 + $0x20] sm:$0xff] }
 0x2f4   :  { %v1481_v45 = vld [vmem:[%s5265_s4 + $0x190] sm:$0xff]  ;;  %v1444_v42 = vld [vmem:[%s5265_s4 + $0x68] sm:$0xff]  ;;  %v1482_v46 = vld [vmem:[%s5265_s4 + $0x198] sm:$0xff] }
 0x2f5   :  { %v1423_v41 = vadd.f32 %v1395_v44, %v1269_v32  ;;  %v1424_v33 = vadd.f32 %v1396_v37, %v1270_v12  ;;  %v1473_v32 = vld [vmem:[%s5265_s4 + $0x150] sm:$0xff]  ;;  %v1436_v12 = vld [vmem:[%s5265_s4 + $0x28] sm:$0xff]  ;;  %v1474_v44 = vld [vmem:[%s5265_s4 + $0x158] sm:$0xff] }
 0x2f6   :  { %v1242_v34 = vpop.permute.xlu1 %1241  ;;  %v1437_v37 = vld [vmem:[%s5265_s4 + $0x30] sm:$0xff] }
 0x2f7   :  { %v2797_v35 = vpack.c.bf16 %v1425_v53, %v1423_v41  ;;  %v2795_v27 = vpack.c.bf16 %v1426_v39, %v1424_v33  ;;  %v1273_v14 = vmul.f32 %v1242_v34, %v3975_v56  ;;  %v1274_v55 = vmul.f32 %v1242_v34, %v3978_v58  ;;  %v1447_v56 = vld [vmem:[%s5265_s4 + $0x80] sm:$0xff]  ;;  %v1448_v58 = vld [vmem:[%s5265_s4 + $0x88] sm:$0xff]  ;;  %v1438_v39 = vld [vmem:[%s5265_s4 + $0x38] sm:$0xff] }
 0x2f8   :  { %v1475_v53 = vld [vmem:[%s5265_s4 + $0x160] sm:$0xff]  ;;  %v1476_v41 = vld [vmem:[%s5265_s4 + $0x168] sm:$0xff]  ;;  %v1441_v34 = vld [vmem:[%s5265_s4 + $0x50] sm:$0xff] }
 0x2f9   :  { %2796 = vmatprep.subr.bf16.mxu0 %v2795_v27  ;;  %2808 = vmatprep.subr.bf16.mxu1 %v2795_v27  ;;  %v1439_v33 = vld [vmem:[%s5265_s4 + $0x40] sm:$0xff]  ;;  %v1442_v27 = vld [vmem:[%s5265_s4 + $0x58] sm:$0xff]  ;;  %v1445_v16 = vld [vmem:[%s5265_s4 + $0x70] sm:$0xff] }
 0x2fa   :  { %2798 = vmatpush1.bf16.msra.mxu0 %v2797_v35  ;;  %2815 = vmatpush1.bf16.msra.mxu1 %v2797_v35  ;;  %v1368_v20 = vpop.permute.xlu1 %1367  ;;  %v1479_v35 = vld [vmem:[%s5265_s4 + $0x180] sm:$0xff] }
 0x2fb   :  { %v1399_v50 = vadd.f32 %v1368_v20, %v1301_v31  ;;  %v1400_v62 = vadd.f32 %v1368_v20, %v1302_v38  ;;  %v1480_v31 = vld [vmem:[%s5265_s4 + $0x188] sm:$0xff]  ;;  %v1443_v38 = vld [vmem:[%s5265_s4 + $0x60] sm:$0xff] }
 0x2fc   :  { %v1483_v20 = vld [vmem:[%s5265_s4 + $0x1a0] sm:$0xff] }
 0x2fd   :  { %v1427_v61 = vadd.f32 %v1399_v50, %v1273_v14  ;;  %v1428_v63 = vadd.f32 %v1400_v62, %v1274_v55  ;;  %v1484_v14 = vld [vmem:[%s5265_s4 + $0x1a8] sm:$0xff]  ;;  %v1485_v55 = vld [vmem:[%s5265_s4 + $0x1b0] sm:$0xff]  ;;  %v1486_v50 = vld [vmem:[%s5265_s4 + $0x1b8] sm:$0xff] }
 0x2fe   :  { %v1487_v62 = vld [vmem:[%s5265_s4 + $0x1c0] sm:$0xff] }
 0x2ff   :  { %v2801_v47 = vpack.c.bf16 %v1429_v2, %v1427_v61  ;;  %v2799_v60 = vpack.c.bf16 %v1430_v4, %v1428_v63  ;;  %v1488_v2 = vld [vmem:[%s5265_s4 + $0x1c8] sm:$0xff]  ;;  %v1489_v4 = vld [vmem:[%s5265_s4 + $0x1d0] sm:$0xff]  ;;  %v1490_v61 = vld [vmem:[%s5265_s4 + $0x1d8] sm:$0xff] }
 0x300   :  { %v1491_v63 = vld [vmem:[%s5265_s4 + $0x1e0] sm:$0xff] }
 0x301   :  { %2800 = vmatprep.subr.bf16.mxu0 %v2799_v60  ;;  %2809 = vmatprep.subr.bf16.mxu1 %v2799_v60  ;;  %v1493_v60 = vld [vmem:[%s5265_s4 + $0x1f0] sm:$0xff] }
 0x302   :  { %2802 = vmatpush1.bf16.msra.mxu0 %v2801_v47  ;;  %2816 = vmatpush1.bf16.msra.mxu1 %v2801_v47  ;;  %v1492_v47 = vld [vmem:[%s5265_s4 + $0x1e8] sm:$0xff] }
 0x305   :  { %2538 = vmatmul.mubr.msk.f32.vlgmr.msra.gmra.mrb[0].mxu1 %vm1515_vm2, %v1446_v1  ;;  %2523 = vmatmul.mubr.msk.f32.vlgmr.msra.gmra.mrb[28].mxu0 %vm1515_vm2, %v1431_v10  ;;  %v1494_v1 = vld [vmem:[%s5265_s4 + $0x1f8] sm:$0xff]  ;;  %v1505_v10 = vld [vmem:[%s5265_s4 + $0x250] sm:$0xff] }
 0x306   :  { %1928 = vmatprep.mubr.f32.mxu1 %v2906_v49  ;;  %1838 = vmatprep.mubr.f32.mxu0 %v2906_v49 }
 0x309   :  { %2539 = vmatmul.mubr.msk.f32.gmra.mrb[2].mxu1 %vm1515_vm2, %v1447_v56  ;;  %2524 = vmatmul.mubr.msk.f32.gmra.mrb[30].mxu0 %vm1515_vm2, %v1432_v13  ;;  %v1495_v56 = vld [vmem:[%s5265_s4 + $0x200] sm:$0xff] }
 0x30a   :  { %1934 = vmatprep.mubr.f32.mxu1 %v2906_v49  ;;  %1844 = vmatprep.mubr.f32.mxu0 %v2906_v49 }
 0x30d   :  { %2540 = vmatmul.mubr.msk.f32.gmra.mrb[4].mxu1 %vm1515_vm2, %v1448_v58  ;;  %2525 = vmatmul.mubr.msk.f32.gmra.mrb[32].mxu0 %vm1515_vm2, %v1433_v21  ;;  %v1496_v58 = vld [vmem:[%s5265_s4 + $0x208] sm:$0xff] }
 0x30e   :  { %1940 = vmatprep.mubr.f32.mxu1 %v2906_v49  ;;  %1850 = vmatprep.mubr.f32.mxu0 %v2906_v49 }
 0x311   :  { %2541 = vmatmul.mubr.msk.f32.gmra.mrb[6].mxu1 %vm1515_vm2, %v1449_v5  ;;  %2526 = vmatmul.mubr.msk.f32.gmra.mrb[34].mxu0 %vm1515_vm2, %v1434_v26  ;;  %v1497_v5 = vld [vmem:[%s5265_s4 + $0x210] sm:$0xff]  ;;  %v1507_v26 = vld [vmem:[%s5265_s4 + $0x260] sm:$0xff] }
 0x312   :  { %1946 = vmatprep.mubr.f32.mxu1 %v2906_v49  ;;  %1856 = vmatprep.mubr.f32.mxu0 %v2906_v49 }
 0x315   :  { %2542 = vmatmul.mubr.msk.f32.gmra.mrb[8].mxu1 %vm1515_vm2, %v1450_v0  ;;  %2527 = vmatmul.mubr.msk.f32.gmra.mrb[36].mxu0 %vm1515_vm2, %v1435_v48  ;;  %v1498_v0 = vld [vmem:[%s5265_s4 + $0x218] sm:$0xff] }
 0x316   :  { %1952 = vmatprep.mubr.f32.mxu1 %v2906_v49  ;;  %1862 = vmatprep.mubr.f32.mxu0 %v2906_v49 }
 0x319   :  { %2543 = vmatmul.mubr.msk.f32.gmra.mrb[10].mxu1 %vm1515_vm2, %v1451_v29  ;;  %2528 = vmatmul.mubr.msk.f32.gmra.mrb[38].mxu0 %vm1515_vm2, %v1436_v12  ;;  %v1499_v29 = vld [vmem:[%s5265_s4 + $0x220] sm:$0xff] }
 0x31a   :  { %1958 = vmatprep.mubr.f32.mxu1 %v2906_v49  ;;  %1868 = vmatprep.mubr.f32.mxu0 %v2906_v49 }
 0x31d   :  { %2544 = vmatmul.mubr.msk.f32.gmra.mrb[12].mxu1 %vm1515_vm2, %v1452_v52  ;;  %2529 = vmatmul.mubr.msk.f32.gmra.mrb[40].mxu0 %vm1515_vm2, %v1437_v37  ;;  %v1509_v37 = vld [vmem:[%s5265_s4 + $0x270] sm:$0xff] }
 0x31e   :  { %1964 = vmatprep.mubr.f32.mxu1 %v2906_v49  ;;  %1874 = vmatprep.mubr.f32.mxu0 %v2906_v49 }
 0x321   :  { %2545 = vmatmul.mubr.msk.f32.gmra.mrb[14].mxu1 %vm1515_vm2, %v1453_v22  ;;  %2530 = vmatmul.mubr.msk.f32.gmra.mrb[42].mxu0 %vm1515_vm2, %v1438_v39 }
 0x322   :  { %1970 = vmatprep.mubr.f32.mxu1 %v2906_v49  ;;  %1880 = vmatprep.mubr.f32.mxu0 %v2906_v49 }
 0x325   :  { %2546 = vmatmul.mubr.msk.f32.gmra.mrb[16].mxu1 %vm1515_vm2, %v1454_v57  ;;  %2531 = vmatmul.mubr.msk.f32.gmra.mrb[44].mxu0 %vm1515_vm2, %v1439_v33  ;;  %v1500_v57 = vld [vmem:[%s5265_s4 + $0x228] sm:$0xff] }
 0x326   :  { %1976 = vmatprep.mubr.f32.mxu1 %v2906_v49  ;;  %1886 = vmatprep.mubr.f32.mxu0 %v2906_v49 }
 0x329   :  { %2547 = vmatmul.mubr.msk.f32.gmra.mrb[18].mxu1 %vm1515_vm2, %v1455_v28  ;;  %2532 = vmatmul.mubr.msk.f32.gmra.mrb[46].mxu0 %vm1515_vm2, %v1440_v40  ;;  %v1511_v40 = vld [vmem:[%s5265_s4 + $0x280] sm:$0xff] }
 0x32a   :  { %1982 = vmatprep.mubr.f32.mxu1 %v2906_v49  ;;  %1892 = vmatprep.mubr.f32.mxu0 %v2906_v49 }
 0x32d   :  { %2548 = vmatmul.mubr.msk.f32.gmra.mrb[20].mxu1 %vm1515_vm2, %v1456_v3  ;;  %2533 = vmatmul.mubr.msk.f32.gmra.mrb[48].mxu0 %vm1515_vm2, %v1441_v34 }
 0x32e   :  { %1988 = vmatprep.mubr.f32.mxu1 %v2906_v49  ;;  %1898 = vmatprep.mubr.f32.mxu0 %v2906_v49 }
 0x331   :  { %2549 = vmatmul.mubr.msk.f32.gmra.mrb[22].mxu1 %vm1515_vm2, %v1457_v30  ;;  %2534 = vmatmul.mubr.msk.f32.gmra.mrb[50].mxu0 %vm1515_vm2, %v1442_v27  ;;  %v1501_v30 = vld [vmem:[%s5265_s4 + $0x230] sm:$0xff] }
 0x332   :  { %1994 = vmatprep.mubr.f32.mxu1 %v2906_v49  ;;  %1904 = vmatprep.mubr.f32.mxu0 %v2906_v49 }
 0x335   :  { %2550 = vmatmul.mubr.msk.f32.gmra.mrb[24].mxu1 %vm1515_vm2, %v1458_v36  ;;  %2535 = vmatmul.mubr.msk.f32.gmra.mrb[52].mxu0 %vm1515_vm2, %v1443_v38  ;;  %v1513_v38 = vld [vmem:[%s5265_s4 + $0x290] sm:$0xff] }
 0x336   :  { %2000 = vmatprep.mubr.f32.mxu1 %v2906_v49  ;;  %1910 = vmatprep.mubr.f32.mxu0 %v2906_v49 }
 0x339   :  { %2551 = vmatmul.mubr.msk.f32.gmra.mrb[26].mxu1 %vm1515_vm2, %v1459_v6  ;;  %2536 = vmatmul.mubr.msk.f32.gmra.mrb[54].mxu0 %vm1515_vm2, %v1444_v42 }
 0x33a   :  { %2006 = vmatprep.mubr.f32.mxu1 %v2906_v49  ;;  %1916 = vmatprep.mubr.f32.mxu0 %v2906_v49 }
 0x33d   :  { %2552 = vmatmul.mubr.msk.f32.gmra.mrb[28].mxu1 %vm1515_vm2, %v1460_v7  ;;  %2537 = vmatmul.mubr.msk.f32.gmra.mrb[56].mxu0 %vm1515_vm2, %v1445_v16  ;;  %v1502_v7 = vld [vmem:[%s5265_s4 + $0x238] sm:$0xff] }
 0x33e   :  { %2012 = vmatprep.mubr.f32.mxu1 %v2906_v49 }
 0x341   :  { %2553 = vmatmul.mubr.msk.f32.gmra.mrb[30].mxu1 %vm1515_vm2, %v1461_v8 }
 0x342   :  { %2018 = vmatprep.mubr.f32.mxu1 %v2906_v49 }
 0x345   :  { %2554 = vmatmul.mubr.msk.f32.gmra.mrb[32].mxu1 %vm1515_vm2, %v1462_v24 }
 0x346   :  { %2024 = vmatprep.mubr.f32.mxu1 %v2906_v49 }
 0x349   :  { %2555 = vmatmul.mubr.msk.f32.gmra.mrb[34].mxu1 %vm1515_vm2, %v1463_v15  ;;  %v1503_v15 = vld [vmem:[%s5265_s4 + $0x240] sm:$0xff] }
 0x34a   :  { %2030 = vmatprep.mubr.f32.mxu1 %v2906_v49 }
 0x34d   :  { %2556 = vmatmul.mubr.msk.f32.gmra.mrb[36].mxu1 %vm1515_vm2, %v1464_v17 }
 0x34e   :  { %2036 = vmatprep.mubr.f32.mxu1 %v2906_v49 }
 0x351   :  { %2557 = vmatmul.mubr.msk.f32.gmra.mrb[38].mxu1 %vm1515_vm2, %v1465_v18 }
 0x352   :  { %2042 = vmatprep.mubr.f32.mxu1 %v2906_v49 }
 0x355   :  { %2558 = vmatmul.mubr.msk.f32.gmra.mrb[40].mxu1 %vm1515_vm2, %v1466_v19  ;;  %v1504_v19 = vld [vmem:[%s5265_s4 + $0x248] sm:$0xff] }
 0x356   :  { %2048 = vmatprep.mubr.f32.mxu1 %v2906_v49 }
 0x359   :  { %2559 = vmatmul.mubr.msk.f32.gmra.mrb[42].mxu1 %vm1515_vm2, %v1467_v59 }
 0x35a   :  { %2054 = vmatprep.mubr.f32.mxu1 %v2906_v49 }
 0x35d   :  { %2560 = vmatmul.mubr.msk.f32.gmra.mrb[44].mxu1 %vm1515_vm2, %v1468_v51 }
 0x35e   :  { %2060 = vmatprep.mubr.f32.mxu1 %v2906_v49 }
 0x361   :  { %2561 = vmatmul.mubr.msk.f32.gmra.mrb[46].mxu1 %vm1515_vm2, %v1469_v9 }
 0x362   :  { %2066 = vmatprep.mubr.f32.mxu1 %v2906_v49 }
 0x365   :  { %2562 = vmatmul.mubr.msk.f32.gmra.mrb[48].mxu1 %vm1515_vm2, %v1470_v23  ;;  %v1506_v23 = vld [vmem:[%s5265_s4 + $0x258] sm:$0xff] }
 0x366   :  { %2072 = vmatprep.mubr.f32.mxu1 %v2906_v49 }
 0x369   :  { %2563 = vmatmul.mubr.msk.f32.gmra.mrb[50].mxu1 %vm1515_vm2, %v1471_v25 }
 0x36a   :  { %2078 = vmatprep.mubr.f32.mxu1 %v2906_v49 }
 0x36d   :  { %2564 = vmatmul.mubr.msk.f32.gmra.mrb[52].mxu1 %vm1515_vm2, %v1472_v11 }
 0x36e   :  { %2084 = vmatprep.mubr.f32.mxu1 %v2906_v49 }
 0x371   :  { %2565 = vmatmul.mubr.msk.f32.gmra.mrb[54].mxu1 %vm1515_vm2, %v1473_v32  ;;  %v1508_v32 = vld [vmem:[%s5265_s4 + $0x268] sm:$0xff] }
 0x372   :  { %2090 = vmatprep.mubr.f32.mxu1 %v2906_v49 }
 0x375   :  { %2566 = vmatmul.mubr.msk.f32.gmra.mrb[56].mxu1 %vm1515_vm2, %v1474_v44 }
 0x376   :  { %2096 = vmatprep.mubr.f32.mxu1 %v2906_v49 }
 0x379   :  { %2567 = vmatmul.mubr.msk.f32.gmra.mrb[58].mxu1 %vm1515_vm2, %v1475_v53 }
 0x37a   :  { %2102 = vmatprep.mubr.f32.mxu1 %v2906_v49 }
 0x37d   :  { %2568 = vmatmul.mubr.msk.f32.gmra.mrb[60].mxu1 %vm1515_vm2, %v1476_v41  ;;  %v1510_v41 = vld [vmem:[%s5265_s4 + $0x278] sm:$0xff] }
 0x37e   :  { %2108 = vmatprep.mubr.f32.mxu1 %v2906_v49 }
 0x381   :  { %2569 = vmatmul.mubr.msk.f32.gmra.mrb[62].mxu1 %vm1515_vm2, %v1477_v54 }
 0x382   :  { %2114 = vmatprep.mubr.f32.mxu1 %v2906_v49 }
 0x385   :  { %2570 = vmatmul.mubr.msk.f32.gmra.mrb[64].mxu1 %vm1515_vm2, %v1478_v43 }
 0x386   :  { %2120 = vmatprep.mubr.f32.mxu1 %v2906_v49 }
 0x389   :  { %2571 = vmatmul.mubr.msk.f32.gmra.mrb[66].mxu1 %vm1515_vm2, %v1479_v35  ;;  %v1512_v35 = vld [vmem:[%s5265_s4 + $0x288] sm:$0xff] }
 0x38a   :  { %2126 = vmatprep.mubr.f32.mxu1 %v2906_v49 }
 0x38d   :  { %2572 = vmatmul.mubr.msk.f32.gmra.mrb[68].mxu1 %vm1515_vm2, %v1480_v31 }
 0x38e   :  { %2132 = vmatprep.mubr.f32.mxu1 %v2906_v49 }
 0x391   :  { %2573 = vmatmul.mubr.msk.f32.gmra.mrb[70].mxu1 %vm1515_vm2, %v1481_v45 }
 0x392   :  { %2138 = vmatprep.mubr.f32.mxu1 %v2906_v49 }
 0x395   :  { %2574 = vmatmul.mubr.msk.f32.gmra.mrb[72].mxu1 %vm1515_vm2, %v1482_v46  ;;  %v1514_v46 = vld [vmem:[%s5265_s4 + $0x298] sm:$0xff] }
 0x396   :  { %2144 = vmatprep.mubr.f32.mxu1 %v2906_v49 }
 0x399   :  { %2575 = vmatmul.mubr.msk.f32.gmra.mrb[74].mxu1 %vm1515_vm2, %v1483_v20 }
 0x39a   :  { %2150 = vmatprep.mubr.f32.mxu1 %v2906_v49 }
 0x39d   :  { %2576 = vmatmul.mubr.msk.f32.gmra.mrb[76].mxu1 %vm1515_vm2, %v1484_v14 }
 0x39e   :  { %2156 = vmatprep.mubr.f32.mxu1 %v2906_v49 }
 0x3a1   :  { %2577 = vmatmul.mubr.msk.f32.gmra.mrb[78].mxu1 %vm1515_vm2, %v1485_v55 }
 0x3a2   :  { %2162 = vmatprep.mubr.f32.mxu1 %v2906_v49 }
 0x3a5   :  { %2578 = vmatmul.mubr.msk.f32.gmra.mrb[80].mxu1 %vm1515_vm2, %v1486_v50 }
 0x3a6   :  { %2168 = vmatprep.mubr.f32.mxu1 %v2906_v49 }
 0x3a9   :  { %2579 = vmatmul.mubr.msk.f32.gmra.mrb[82].mxu1 %vm1515_vm2, %v1487_v62 }
 0x3aa   :  { %2174 = vmatprep.mubr.f32.mxu1 %v2906_v49 }
 0x3ad   :  { %2580 = vmatmul.mubr.msk.f32.gmra.mrb[84].mxu1 %vm1515_vm2, %v1488_v2 }
 0x3ae   :  { %2180 = vmatprep.mubr.f32.mxu1 %v2906_v49 }
 0x3b1   :  { %2581 = vmatmul.mubr.msk.f32.gmra.mrb[86].mxu1 %vm1515_vm2, %v1489_v4 }
 0x3b2   :  { %2186 = vmatprep.mubr.f32.mxu1 %v2906_v49 }
 0x3b5   :  { %2582 = vmatmul.mubr.msk.f32.gmra.mrb[88].mxu1 %vm1515_vm2, %v1490_v61 }
 0x3b6   :  { %2192 = vmatprep.mubr.f32.mxu1 %v2906_v49 }
 0x3b9   :  { %2583 = vmatmul.mubr.msk.f32.gmra.mrb[90].mxu1 %vm1515_vm2, %v1491_v63 }
 0x3ba   :  { %2198 = vmatprep.mubr.f32.mxu1 %v2906_v49 }
 0x3bd   :  { %2584 = vmatmul.mubr.msk.f32.gmra.mrb[92].mxu1 %vm1515_vm2, %v1492_v47 }
 0x3be   :  { %2204 = vmatprep.mubr.f32.mxu1 %v2906_v49 }
 0x3c1   :  { %2585 = vmatmul.mubr.msk.f32.gmra.mrb[94].mxu1 %vm1515_vm2, %v1493_v60 }
 0x3c2   :  { %2210 = vmatprep.mubr.f32.mxu1 %v2906_v49 }
 0x3c5   :  { %2586 = vmatmul.mubr.msk.f32.gmra.mrb[96].mxu1 %vm1515_vm2, %v1494_v1 }
 0x3c6   :  { %2216 = vmatprep.mubr.f32.mxu1 %v2906_v49 }
 0x3c9   :  { %2587 = vmatmul.mubr.msk.f32.gmra.mrb[98].mxu1 %vm1515_vm2, %v1495_v56 }
 0x3ca   :  { %2222 = vmatprep.mubr.f32.mxu1 %v2906_v49 }
 0x3cd   :  { %2588 = vmatmul.mubr.msk.f32.gmra.mrb[100].mxu1 %vm1515_vm2, %v1496_v58 }
 0x3ce   :  { %2228 = vmatprep.mubr.f32.mxu1 %v2906_v49 }
 0x3d1   :  { %2589 = vmatmul.mubr.msk.f32.gmra.mrb[102].mxu1 %vm1515_vm2, %v1497_v5 }
 0x3d2   :  { %2234 = vmatprep.mubr.f32.mxu1 %v2906_v49 }
 0x3d5   :  { %2590 = vmatmul.mubr.msk.f32.gmra.mrb[104].mxu1 %vm1515_vm2, %v1498_v0 }
 0x3d6   :  { %2240 = vmatprep.mubr.f32.mxu1 %v2906_v49 }
 0x3d8   :  { %v1924_v52 = vpop.f32.mrb[0].mxu1  ;;  %v1834_v56 = vpop.f32.mrb[28].mxu0 }
 0x3d9   :  { %2367 = vst [vmem:[%s5266_s7 + $0xf0] sm:$0xff] %v1924_v52  ;;  %v1926_v22 = vpop.f32.mrb[1].mxu1  ;;  %2591 = vmatmul.mubr.msk.f32.gmra.mrb[106].mxu1 %vm1515_vm2, %v1499_v29  ;;  %2337 = vst [vmem:[%s5266_s7] sm:$0xff] %v1834_v56  ;;  %v1836_v5 = vpop.f32.mrb[29].mxu0 }
 0x3da   :  { %2368 = vst.msk [vmem:[%s5266_s7 + $0xf8] sm:$0xff] %vm884_vm1, %v1926_v22  ;;  %2246 = vmatprep.mubr.f32.mxu1 %v2906_v49  ;;  %2338 = vst.msk [vmem:[%s5266_s7 + $0x8] sm:$0xff] %vm884_vm1, %v1836_v5 }
 0x3dc   :  { %v1930_v28 = vpop.f32.mrb[2].mxu1  ;;  %v1840_v29 = vpop.f32.mrb[30].mxu0 }
 0x3dd   :  { %2369 = vst [vmem:[%s5266_s7 + $0x100] sm:$0xff] %v1930_v28  ;;  %v1932_v3 = vpop.f32.mrb[3].mxu1  ;;  %2592 = vmatmul.mubr.msk.f32.gmra.mrb[108].mxu1 %vm1515_vm2, %v1500_v57  ;;  %2339 = vst [vmem:[%s5266_s7 + $0x10] sm:$0xff] %v1840_v29  ;;  %v1842_v22 = vpop.f32.mrb[31].mxu0 }
 0x3de   :  { %2370 = vst.msk [vmem:[%s5266_s7 + $0x108] sm:$0xff] %vm884_vm1, %v1932_v3  ;;  %2252 = vmatprep.mubr.f32.mxu1 %v2906_v49  ;;  %2340 = vst.msk [vmem:[%s5266_s7 + $0x18] sm:$0xff] %vm884_vm1, %v1842_v22 }
 0x3e0   :  { %v1936_v36 = vpop.f32.mrb[4].mxu1  ;;  %v1846_v28 = vpop.f32.mrb[32].mxu0 }
 0x3e1   :  { %2371 = vst [vmem:[%s5266_s7 + $0x110] sm:$0xff] %v1936_v36  ;;  %v1938_v6 = vpop.f32.mrb[5].mxu1  ;;  %2593 = vmatmul.mubr.msk.f32.gmra.mrb[110].mxu1 %vm1515_vm2, %v1501_v30  ;;  %2341 = vst [vmem:[%s5266_s7 + $0x20] sm:$0xff] %v1846_v28  ;;  %v1848_v30 = vpop.f32.mrb[33].mxu0 }
 0x3e2   :  { %2372 = vst.msk [vmem:[%s5266_s7 + $0x118] sm:$0xff] %vm884_vm1, %v1938_v6  ;;  %2258 = vmatprep.mubr.f32.mxu1 %v2906_v49  ;;  %2342 = vst.msk [vmem:[%s5266_s7 + $0x28] sm:$0xff] %vm884_vm1, %v1848_v30 }
 0x3e4   :  { %v1942_v8 = vpop.f32.mrb[6].mxu1  ;;  %v1852_v6 = vpop.f32.mrb[34].mxu0 }
 0x3e5   :  { %2373 = vst [vmem:[%s5266_s7 + $0x120] sm:$0xff] %v1942_v8  ;;  %v1944_v24 = vpop.f32.mrb[7].mxu1  ;;  %2594 = vmatmul.mubr.msk.f32.gmra.mrb[112].mxu1 %vm1515_vm2, %v1502_v7  ;;  %2343 = vst [vmem:[%s5266_s7 + $0x30] sm:$0xff] %v1852_v6  ;;  %v1854_v8 = vpop.f32.mrb[35].mxu0 }
 0x3e6   :  { %2374 = vst.msk [vmem:[%s5266_s7 + $0x128] sm:$0xff] %vm884_vm1, %v1944_v24  ;;  %2264 = vmatprep.mubr.f32.mxu1 %v2906_v49  ;;  %2344 = vst.msk [vmem:[%s5266_s7 + $0x38] sm:$0xff] %vm884_vm1, %v1854_v8 }
 0x3e8   :  { %v1948_v17 = vpop.f32.mrb[8].mxu1 }
 0x3e9   :  { %2375 = vst [vmem:[%s5266_s7 + $0x130] sm:$0xff] %v1948_v17  ;;  %v1950_v18 = vpop.f32.mrb[9].mxu1  ;;  %2595 = vmatmul.mubr.msk.f32.gmra.mrb[114].mxu1 %vm1515_vm2, %v1503_v15  ;;  %v1858_v15 = vpop.f32.mrb[36].mxu0 }
 0x3ea   :  { %2376 = vst.msk [vmem:[%s5266_s7 + $0x138] sm:$0xff] %vm884_vm1, %v1950_v18  ;;  %2270 = vmatprep.mubr.f32.mxu1 %v2906_v49  ;;  %2345 = vst [vmem:[%s5266_s7 + $0x40] sm:$0xff] %v1858_v15  ;;  %v1860_v18 = vpop.f32.mrb[37].mxu0 }
 0x3eb   :  { %2346 = vst.msk [vmem:[%s5266_s7 + $0x48] sm:$0xff] %vm884_vm1, %v1860_v18 }
 0x3ec   :  { %v1954_v59 = vpop.f32.mrb[10].mxu1 }
 0x3ed   :  { %2377 = vst [vmem:[%s5266_s7 + $0x140] sm:$0xff] %v1954_v59  ;;  %v1956_v51 = vpop.f32.mrb[11].mxu1  ;;  %2596 = vmatmul.mubr.msk.f32.gmra.mrb[116].mxu1 %vm1515_vm2, %v1504_v19  ;;  %v1864_v59 = vpop.f32.mrb[38].mxu0 }
 0x3ee   :  { %2378 = vst.msk [vmem:[%s5266_s7 + $0x148] sm:$0xff] %vm884_vm1, %v1956_v51  ;;  %2276 = vmatprep.mubr.f32.mxu1 %v2906_v49  ;;  %2347 = vst [vmem:[%s5266_s7 + $0x50] sm:$0xff] %v1864_v59 }
 0x3f0   :  { %v1960_v9 = vpop.f32.mrb[12].mxu1 }
 0x3f1   :  { %2379 = vst [vmem:[%s5266_s7 + $0x150] sm:$0xff] %v1960_v9  ;;  %v1962_v13 = vpop.f32.mrb[13].mxu1  ;;  %2597 = vmatmul.mubr.msk.f32.gmra.mrb[118].mxu1 %vm1515_vm2, %v1505_v10  ;;  %v1866_v10 = vpop.f32.mrb[39].mxu0 }
 0x3f2   :  { %2380 = vst.msk [vmem:[%s5266_s7 + $0x158] sm:$0xff] %vm884_vm1, %v1962_v13  ;;  %2282 = vmatprep.mubr.f32.mxu1 %v2906_v49  ;;  %2348 = vst.msk [vmem:[%s5266_s7 + $0x58] sm:$0xff] %vm884_vm1, %v1866_v10  ;;  %v1870_v13 = vpop.f32.mrb[40].mxu0 }
 0x3f3   :  { %2349 = vst [vmem:[%s5266_s7 + $0x60] sm:$0xff] %v1870_v13 }
 0x3f4   :  { %v1966_v21 = vpop.f32.mrb[14].mxu1 }
 0x3f5   :  { %2381 = vst [vmem:[%s5266_s7 + $0x160] sm:$0xff] %v1966_v21  ;;  %v1968_v25 = vpop.f32.mrb[15].mxu1  ;;  %2598 = vmatmul.mubr.msk.f32.gmra.mrb[120].mxu1 %vm1515_vm2, %v1506_v23  ;;  %v1872_v21 = vpop.f32.mrb[41].mxu0 }
 0x3f6   :  { %2382 = vst.msk [vmem:[%s5266_s7 + $0x168] sm:$0xff] %vm884_vm1, %v1968_v25  ;;  %2288 = vmatprep.mubr.f32.mxu1 %v2906_v49  ;;  %2350 = vst.msk [vmem:[%s5266_s7 + $0x68] sm:$0xff] %vm884_vm1, %v1872_v21 }
 0x3f8   :  { %v1972_v11 = vpop.f32.mrb[16].mxu1 }
 0x3f9   :  { %2383 = vst [vmem:[%s5266_s7 + $0x170] sm:$0xff] %v1972_v11  ;;  %v1974_v48 = vpop.f32.mrb[17].mxu1  ;;  %2599 = vmatmul.mubr.msk.f32.gmra.mrb[122].mxu1 %vm1515_vm2, %v1507_v26  ;;  %v1876_v26 = vpop.f32.mrb[42].mxu0 }
 0x3fa   :  { %2384 = vst.msk [vmem:[%s5266_s7 + $0x178] sm:$0xff] %vm884_vm1, %v1974_v48  ;;  %2294 = vmatprep.mubr.f32.mxu1 %v2906_v49  ;;  %2351 = vst [vmem:[%s5266_s7 + $0x70] sm:$0xff] %v1876_v26  ;;  %v1878_v48 = vpop.f32.mrb[43].mxu0 }
 0x3fb   :  { %2352 = vst.msk [vmem:[%s5266_s7 + $0x78] sm:$0xff] %vm884_vm1, %v1878_v48 }
 0x3fc   :  { %v1978_v12 = vpop.f32.mrb[18].mxu1 }
 0x3fd   :  { %2385 = vst [vmem:[%s5266_s7 + $0x180] sm:$0xff] %v1978_v12  ;;  %v1980_v44 = vpop.f32.mrb[19].mxu1  ;;  %2600 = vmatmul.mubr.msk.f32.gmra.mrb[124].mxu1 %vm1515_vm2, %v1508_v32  ;;  %v1882_v12 = vpop.f32.mrb[44].mxu0 }
 0x3fe   :  { %2386 = vst.msk [vmem:[%s5266_s7 + $0x188] sm:$0xff] %vm884_vm1, %v1980_v44  ;;  %2300 = vmatprep.mubr.f32.mxu1 %v2906_v49  ;;  %2353 = vst [vmem:[%s5266_s7 + $0x80] sm:$0xff] %v1882_v12 }
 0x400   :  { %v1984_v53 = vpop.f32.mrb[20].mxu1 }
 0x401   :  { %2387 = vst [vmem:[%s5266_s7 + $0x190] sm:$0xff] %v1984_v53  ;;  %v1986_v39 = vpop.f32.mrb[21].mxu1  ;;  %2601 = vmatmul.mubr.msk.f32.gmra.mrb[126].mxu1 %vm1515_vm2, %v1509_v37  ;;  %v1884_v37 = vpop.f32.mrb[45].mxu0 }
 0x402   :  { %2388 = vst.msk [vmem:[%s5266_s7 + $0x198] sm:$0xff] %vm884_vm1, %v1986_v39  ;;  %2306 = vmatprep.mubr.f32.mxu1 %v2906_v49  ;;  %2354 = vst.msk [vmem:[%s5266_s7 + $0x88] sm:$0xff] %vm884_vm1, %v1884_v37  ;;  %v1888_v39 = vpop.f32.mrb[46].mxu0 }
 0x403   :  { %2355 = vst [vmem:[%s5266_s7 + $0x90] sm:$0xff] %v1888_v39 }
 0x404   :  { %v1990_v33 = vpop.f32.mrb[22].mxu1 }
 0x405   :  { %2389 = vst [vmem:[%s5266_s7 + $0x1a0] sm:$0xff] %v1990_v33  ;;  %v1992_v54 = vpop.f32.mrb[23].mxu1  ;;  %2602 = vmatmul.mubr.msk.f32.gmra.mrb[128].mxu1 %vm1515_vm2, %v1510_v41  ;;  %v1890_v33 = vpop.f32.mrb[47].mxu0 }
 0x406   :  { %2390 = vst.msk [vmem:[%s5266_s7 + $0x1a8] sm:$0xff] %vm884_vm1, %v1992_v54  ;;  %2312 = vmatprep.mubr.f32.mxu1 %v2906_v49  ;;  %2356 = vst.msk [vmem:[%s5266_s7 + $0x98] sm:$0xff] %vm884_vm1, %v1890_v33 }
 0x408   :  { %v1996_v43 = vpop.f32.mrb[24].mxu1 }
 0x409   :  { %2391 = vst [vmem:[%s5266_s7 + $0x1b0] sm:$0xff] %v1996_v43  ;;  %v1998_v34 = vpop.f32.mrb[25].mxu1  ;;  %2603 = vmatmul.mubr.msk.f32.gmra.mrb[130].mxu1 %vm1515_vm2, %v1511_v40  ;;  %v1894_v40 = vpop.f32.mrb[48].mxu0 }
 0x40a   :  { %2392 = vst.msk [vmem:[%s5266_s7 + $0x1b8] sm:$0xff] %vm884_vm1, %v1998_v34  ;;  %2318 = vmatprep.mubr.f32.mxu1 %v2906_v49  ;;  %2357 = vst [vmem:[%s5266_s7 + $0xa0] sm:$0xff] %v1894_v40  ;;  %v1896_v34 = vpop.f32.mrb[49].mxu0 }
 0x40b   :  { %2358 = vst.msk [vmem:[%s5266_s7 + $0xa8] sm:$0xff] %vm884_vm1, %v1896_v34 }
 0x40c   :  { %v2002_v27 = vpop.f32.mrb[26].mxu1 }
 0x40d   :  { %2393 = vst [vmem:[%s5266_s7 + $0x1c0] sm:$0xff] %v2002_v27  ;;  %v2004_v31 = vpop.f32.mrb[27].mxu1  ;;  %2604 = vmatmul.mubr.msk.f32.gmra.mrb[132].mxu1 %vm1515_vm2, %v1512_v35  ;;  %v1900_v27 = vpop.f32.mrb[50].mxu0 }
 0x40e   :  { %2394 = vst.msk [vmem:[%s5266_s7 + $0x1c8] sm:$0xff] %vm884_vm1, %v2004_v31  ;;  %2324 = vmatprep.mubr.f32.mxu1 %v2906_v49  ;;  %2359 = vst [vmem:[%s5266_s7 + $0xb0] sm:$0xff] %v1900_v27 }
 0x410   :  { %v2008_v45 = vpop.f32.mrb[28].mxu1 }
 0x411   :  { %2395 = vst [vmem:[%s5266_s7 + $0x1d0] sm:$0xff] %v2008_v45  ;;  %v2010_v42 = vpop.f32.mrb[29].mxu1  ;;  %2605 = vmatmul.mubr.msk.f32.gmra.mrb[134].mxu1 %vm1515_vm2, %v1513_v38  ;;  %v1902_v38 = vpop.f32.mrb[51].mxu0 }
 0x412   :  { %2396 = vst.msk [vmem:[%s5266_s7 + $0x1d8] sm:$0xff] %vm884_vm1, %v2010_v42  ;;  %2330 = vmatprep.mubr.f32.mxu1 %v2906_v49  ;;  %2360 = vst.msk [vmem:[%s5266_s7 + $0xb8] sm:$0xff] %vm884_vm1, %v1902_v38  ;;  %v1906_v42 = vpop.f32.mrb[52].mxu0 }
 0x413   :  { %2361 = vst [vmem:[%s5266_s7 + $0xc0] sm:$0xff] %v1906_v42 }
 0x414   :  { %v2014_v16 = vpop.f32.mrb[30].mxu1 }
 0x415   :  { %2397 = vst [vmem:[%s5266_s7 + $0x1e0] sm:$0xff] %v2014_v16  ;;  %v2016_v20 = vpop.f32.mrb[31].mxu1  ;;  %2606 = vmatmul.mubr.msk.f32.gmra.mrb[136].mxu1 %vm1515_vm2, %v1514_v46  ;;  %v1908_v16 = vpop.f32.mrb[53].mxu0 }
 0x416   :  { %2398 = vst.msk [vmem:[%s5266_s7 + $0x1e8] sm:$0xff] %vm884_vm1, %v2016_v20  ;;  %2362 = vst.msk [vmem:[%s5266_s7 + $0xc8] sm:$0xff] %vm884_vm1, %v1908_v16 }
 0x418   :  { %v2020_v14 = vpop.f32.mrb[32].mxu1 }
 0x419   :  { %2399 = vst [vmem:[%s5266_s7 + $0x1f0] sm:$0xff] %v2020_v14  ;;  %v2022_v49 = vpop.f32.mrb[33].mxu1  ;;  %v1912_v14 = vpop.f32.mrb[54].mxu0 }
 0x41a   :  { %2400 = vst.msk [vmem:[%s5266_s7 + $0x1f8] sm:$0xff] %vm884_vm1, %v2022_v49  ;;  %2363 = vst [vmem:[%s5266_s7 + $0xd0] sm:$0xff] %v1912_v14 }
 0x41c   :  { %v2026_v55 = vpop.f32.mrb[34].mxu1 }
 0x41d   :  { %2401 = vst [vmem:[%s5266_s7 + $0x200] sm:$0xff] %v2026_v55  ;;  %v2028_v50 = vpop.f32.mrb[35].mxu1  ;;  %v1914_v55 = vpop.f32.mrb[55].mxu0 }
 0x41e   :  { %2402 = vst.msk [vmem:[%s5266_s7 + $0x208] sm:$0xff] %vm884_vm1, %v2028_v50  ;;  %2364 = vst.msk [vmem:[%s5266_s7 + $0xd8] sm:$0xff] %vm884_vm1, %v1914_v55 }
 0x420   :  { %v2032_v62 = vpop.f32.mrb[36].mxu1 }
 0x421   :  { %2403 = vst [vmem:[%s5266_s7 + $0x210] sm:$0xff] %v2032_v62  ;;  %v2034_v2 = vpop.f32.mrb[37].mxu1  ;;  %v1918_v62 = vpop.f32.mrb[56].mxu0 }
 0x422   :  { %2404 = vst.msk [vmem:[%s5266_s7 + $0x218] sm:$0xff] %vm884_vm1, %v2034_v2  ;;  %2365 = vst [vmem:[%s5266_s7 + $0xe0] sm:$0xff] %v1918_v62 }
 0x424   :  { %v2038_v4 = vpop.f32.mrb[38].mxu1 }
 0x425   :  { %2405 = vst [vmem:[%s5266_s7 + $0x220] sm:$0xff] %v2038_v4  ;;  %v2040_v61 = vpop.f32.mrb[39].mxu1  ;;  %v1920_v4 = vpop.f32.mrb[57].mxu0 }
 0x426   :  { %2406 = vst.msk [vmem:[%s5266_s7 + $0x228] sm:$0xff] %vm884_vm1, %v2040_v61  ;;  %2366 = vst.msk [vmem:[%s5266_s7 + $0xe8] sm:$0xff] %vm884_vm1, %v1920_v4 }
 0x428   :  { %v2044_v63 = vpop.f32.mrb[40].mxu1 }
 0x429   :  { %2407 = vst [vmem:[%s5266_s7 + $0x230] sm:$0xff] %v2044_v63  ;;  %v2046_v47 = vpop.f32.mrb[41].mxu1 }
 0x42a   :  { %2408 = vst.msk [vmem:[%s5266_s7 + $0x238] sm:$0xff] %vm884_vm1, %v2046_v47 }
 0x42c   :  { %v2050_v60 = vpop.f32.mrb[42].mxu1 }
 0x42d   :  { %2409 = vst [vmem:[%s5266_s7 + $0x240] sm:$0xff] %v2050_v60  ;;  %v2052_v1 = vpop.f32.mrb[43].mxu1 }
 0x42e   :  { %2410 = vst.msk [vmem:[%s5266_s7 + $0x248] sm:$0xff] %vm884_vm1, %v2052_v1 }
 0x430   :  { %v2056_v58 = vpop.f32.mrb[44].mxu1 }
 0x431   :  { %2411 = vst [vmem:[%s5266_s7 + $0x250] sm:$0xff] %v2056_v58  ;;  %v2058_v0 = vpop.f32.mrb[45].mxu1 }
 0x432   :  { %2412 = vst.msk [vmem:[%s5266_s7 + $0x258] sm:$0xff] %vm884_vm1, %v2058_v0 }
 0x434   :  { %v2062_v52 = vpop.f32.mrb[46].mxu1 }
 0x435   :  { %2413 = vst [vmem:[%s5266_s7 + $0x260] sm:$0xff] %v2062_v52  ;;  %v2064_v57 = vpop.f32.mrb[47].mxu1 }
 0x436   :  { %2414 = vst.msk [vmem:[%s5266_s7 + $0x268] sm:$0xff] %vm884_vm1, %v2064_v57 }
 0x438   :  { %v2068_v3 = vpop.f32.mrb[48].mxu1 }
 0x439   :  { %2415 = vst [vmem:[%s5266_s7 + $0x270] sm:$0xff] %v2068_v3  ;;  %v2070_v36 = vpop.f32.mrb[49].mxu1 }
 0x43a   :  { %2416 = vst.msk [vmem:[%s5266_s7 + $0x278] sm:$0xff] %vm884_vm1, %v2070_v36 }
 0x43c   :  { %v2074_v7 = vpop.f32.mrb[50].mxu1 }
 0x43d   :  { %2417 = vst [vmem:[%s5266_s7 + $0x280] sm:$0xff] %v2074_v7  ;;  %v2076_v24 = vpop.f32.mrb[51].mxu1 }
 0x43e   :  { %2418 = vst.msk [vmem:[%s5266_s7 + $0x288] sm:$0xff] %vm884_vm1, %v2076_v24 }
 0x440   :  { %v2080_v17 = vpop.f32.mrb[52].mxu1 }
 0x441   :  { %2419 = vst [vmem:[%s5266_s7 + $0x290] sm:$0xff] %v2080_v17  ;;  %v2082_v19 = vpop.f32.mrb[53].mxu1 }
 0x442   :  { %2420 = vst.msk [vmem:[%s5266_s7 + $0x298] sm:$0xff] %vm884_vm1, %v2082_v19 }
 0x444   :  { %v2086_v51 = vpop.f32.mrb[54].mxu1 }
 0x445   :  { %2421 = vst [vmem:[%s5266_s7 + $0x2a0] sm:$0xff] %v2086_v51  ;;  %v2088_v9 = vpop.f32.mrb[55].mxu1 }
 0x446   :  { %2422 = vst.msk [vmem:[%s5266_s7 + $0x2a8] sm:$0xff] %vm884_vm1, %v2088_v9 }
 0x448   :  { %v2092_v23 = vpop.f32.mrb[56].mxu1 }
 0x449   :  { %2423 = vst [vmem:[%s5266_s7 + $0x2b0] sm:$0xff] %v2092_v23  ;;  %v2094_v25 = vpop.f32.mrb[57].mxu1 }
 0x44a   :  { %2424 = vst.msk [vmem:[%s5266_s7 + $0x2b8] sm:$0xff] %vm884_vm1, %v2094_v25 }
 0x44c   :  { %v2098_v11 = vpop.f32.mrb[58].mxu1 }
 0x44d   :  { %2425 = vst [vmem:[%s5266_s7 + $0x2c0] sm:$0xff] %v2098_v11  ;;  %v2100_v32 = vpop.f32.mrb[59].mxu1 }
 0x44e   :  { %2426 = vst.msk [vmem:[%s5266_s7 + $0x2c8] sm:$0xff] %vm884_vm1, %v2100_v32 }
 0x450   :  { %v2104_v44 = vpop.f32.mrb[60].mxu1 }
 0x451   :  { %2427 = vst [vmem:[%s5266_s7 + $0x2d0] sm:$0xff] %v2104_v44  ;;  %v2106_v53 = vpop.f32.mrb[61].mxu1 }
 0x452   :  { %2428 = vst.msk [vmem:[%s5266_s7 + $0x2d8] sm:$0xff] %vm884_vm1, %v2106_v53 }
 0x454   :  { %v2110_v41 = vpop.f32.mrb[62].mxu1 }
 0x455   :  { %2429 = vst [vmem:[%s5266_s7 + $0x2e0] sm:$0xff] %v2110_v41  ;;  %v2112_v54 = vpop.f32.mrb[63].mxu1 }
 0x456   :  { %2430 = vst.msk [vmem:[%s5266_s7 + $0x2e8] sm:$0xff] %vm884_vm1, %v2112_v54 }
 0x458   :  { %v2116_v43 = vpop.f32.mrb[64].mxu1 }
 0x459   :  { %2431 = vst [vmem:[%s5266_s7 + $0x2f0] sm:$0xff] %v2116_v43  ;;  %v2118_v35 = vpop.f32.mrb[65].mxu1 }
 0x45a   :  { %2432 = vst.msk [vmem:[%s5266_s7 + $0x2f8] sm:$0xff] %vm884_vm1, %v2118_v35 }
 0x45c   :  { %v2122_v31 = vpop.f32.mrb[66].mxu1 }
 0x45d   :  { %2433 = vst [vmem:[%s5266_s7 + $0x300] sm:$0xff] %v2122_v31  ;;  %v2124_v45 = vpop.f32.mrb[67].mxu1 }
 0x45e   :  { %2434 = vst.msk [vmem:[%s5266_s7 + $0x308] sm:$0xff] %vm884_vm1, %v2124_v45 }
 0x460   :  { %v2128_v46 = vpop.f32.mrb[68].mxu1 }
 0x461   :  { %2435 = vst [vmem:[%s5266_s7 + $0x310] sm:$0xff] %v2128_v46  ;;  %v2130_v20 = vpop.f32.mrb[69].mxu1 }
 0x462   :  { %2436 = vst.msk [vmem:[%s5266_s7 + $0x318] sm:$0xff] %vm884_vm1, %v2130_v20 }
 0x464   :  { %v2134_v49 = vpop.f32.mrb[70].mxu1 }
 0x465   :  { %2437 = vst [vmem:[%s5266_s7 + $0x320] sm:$0xff] %v2134_v49  ;;  %v2136_v50 = vpop.f32.mrb[71].mxu1 }
 0x466   :  { %2438 = vst.msk [vmem:[%s5266_s7 + $0x328] sm:$0xff] %vm884_vm1, %v2136_v50 }
 0x468   :  { %v2140_v2 = vpop.f32.mrb[72].mxu1 }
 0x469   :  { %2439 = vst [vmem:[%s5266_s7 + $0x330] sm:$0xff] %v2140_v2  ;;  %v2142_v61 = vpop.f32.mrb[73].mxu1 }
 0x46a   :  { %2440 = vst.msk [vmem:[%s5266_s7 + $0x338] sm:$0xff] %vm884_vm1, %v2142_v61 }
 0x46c   :  { %v2146_v63 = vpop.f32.mrb[74].mxu1 }
 0x46d   :  { %2441 = vst [vmem:[%s5266_s7 + $0x340] sm:$0xff] %v2146_v63  ;;  %v2148_v47 = vpop.f32.mrb[75].mxu1 }
 0x46e   :  { %2442 = vst.msk [vmem:[%s5266_s7 + $0x348] sm:$0xff] %vm884_vm1, %v2148_v47 }
 0x470   :  { %v2152_v60 = vpop.f32.mrb[76].mxu1 }
 0x471   :  { %2443 = vst [vmem:[%s5266_s7 + $0x350] sm:$0xff] %v2152_v60  ;;  %v2154_v1 = vpop.f32.mrb[77].mxu1 }
 0x472   :  { %2444 = vst.msk [vmem:[%s5266_s7 + $0x358] sm:$0xff] %vm884_vm1, %v2154_v1 }
 0x474   :  { %v2158_v56 = vpop.f32.mrb[78].mxu1 }
 0x475   :  { %2445 = vst [vmem:[%s5266_s7 + $0x360] sm:$0xff] %v2158_v56  ;;  %v2160_v58 = vpop.f32.mrb[79].mxu1 }
 0x476   :  { %2446 = vst.msk [vmem:[%s5266_s7 + $0x368] sm:$0xff] %vm884_vm1, %v2160_v58 }
 0x478   :  { %v2164_v5 = vpop.f32.mrb[80].mxu1 }
 0x479   :  { %2447 = vst [vmem:[%s5266_s7 + $0x370] sm:$0xff] %v2164_v5  ;;  %v2166_v0 = vpop.f32.mrb[81].mxu1 }
 0x47a   :  { %2448 = vst.msk [vmem:[%s5266_s7 + $0x378] sm:$0xff] %vm884_vm1, %v2166_v0 }
 0x47c   :  { %v2170_v29 = vpop.f32.mrb[82].mxu1 }
 0x47d   :  { %2449 = vst [vmem:[%s5266_s7 + $0x380] sm:$0xff] %v2170_v29  ;;  %v2172_v52 = vpop.f32.mrb[83].mxu1 }
 0x47e   :  { %2450 = vst.msk [vmem:[%s5266_s7 + $0x388] sm:$0xff] %vm884_vm1, %v2172_v52 }
 0x480   :  { %v2176_v22 = vpop.f32.mrb[84].mxu1 }
 0x481   :  { %2451 = vst [vmem:[%s5266_s7 + $0x390] sm:$0xff] %v2176_v22  ;;  %v2178_v57 = vpop.f32.mrb[85].mxu1 }
 0x482   :  { %2452 = vst.msk [vmem:[%s5266_s7 + $0x398] sm:$0xff] %vm884_vm1, %v2178_v57 }
 0x484   :  { %v2182_v28 = vpop.f32.mrb[86].mxu1 }
 0x485   :  { %2453 = vst [vmem:[%s5266_s7 + $0x3a0] sm:$0xff] %v2182_v28  ;;  %v2184_v3 = vpop.f32.mrb[87].mxu1 }
 0x486   :  { %2454 = vst.msk [vmem:[%s5266_s7 + $0x3a8] sm:$0xff] %vm884_vm1, %v2184_v3 }
 0x488   :  { %v2188_v30 = vpop.f32.mrb[88].mxu1 }
 0x489   :  { %2455 = vst [vmem:[%s5266_s7 + $0x3b0] sm:$0xff] %v2188_v30  ;;  %v2190_v36 = vpop.f32.mrb[89].mxu1 }
 0x48a   :  { %2456 = vst.msk [vmem:[%s5266_s7 + $0x3b8] sm:$0xff] %vm884_vm1, %v2190_v36 }
 0x48c   :  { %v2194_v6 = vpop.f32.mrb[90].mxu1 }
 0x48d   :  { %2457 = vst [vmem:[%s5266_s7 + $0x3c0] sm:$0xff] %v2194_v6  ;;  %v2196_v7 = vpop.f32.mrb[91].mxu1 }
 0x48e   :  { %2458 = vst.msk [vmem:[%s5266_s7 + $0x3c8] sm:$0xff] %vm884_vm1, %v2196_v7 }
 0x490   :  { %v2200_v8 = vpop.f32.mrb[92].mxu1 }
 0x491   :  { %2459 = vst [vmem:[%s5266_s7 + $0x3d0] sm:$0xff] %v2200_v8  ;;  %v2202_v24 = vpop.f32.mrb[93].mxu1 }
 0x492   :  { %2460 = vst.msk [vmem:[%s5266_s7 + $0x3d8] sm:$0xff] %vm884_vm1, %v2202_v24 }
 0x494   :  { %v2206_v15 = vpop.f32.mrb[94].mxu1 }
 0x495   :  { %2461 = vst [vmem:[%s5266_s7 + $0x3e0] sm:$0xff] %v2206_v15  ;;  %v2208_v17 = vpop.f32.mrb[95].mxu1 }
 0x496   :  { %2462 = vst.msk [vmem:[%s5266_s7 + $0x3e8] sm:$0xff] %vm884_vm1, %v2208_v17 }
 0x498   :  { %v2212_v18 = vpop.f32.mrb[96].mxu1 }
 0x499   :  { %2463 = vst [vmem:[%s5266_s7 + $0x3f0] sm:$0xff] %v2212_v18  ;;  %v2214_v19 = vpop.f32.mrb[97].mxu1 }
 0x49a   :  { %2464 = vst.msk [vmem:[%s5266_s7 + $0x3f8] sm:$0xff] %vm884_vm1, %v2214_v19 }
 0x49c   :  { %v2218_v59 = vpop.f32.mrb[98].mxu1 }
 0x49d   :  { %2465 = vst [vmem:[%s5266_s7 + $0x400] sm:$0xff] %v2218_v59  ;;  %v2220_v51 = vpop.f32.mrb[99].mxu1 }
 0x49e   :  { %2466 = vst.msk [vmem:[%s5266_s7 + $0x408] sm:$0xff] %vm884_vm1, %v2220_v51 }
 0x4a0   :  { %v2224_v10 = vpop.f32.mrb[100].mxu1 }
 0x4a1   :  { %2467 = vst [vmem:[%s5266_s7 + $0x410] sm:$0xff] %v2224_v10  ;;  %v2226_v9 = vpop.f32.mrb[101].mxu1 }
 0x4a2   :  { %2468 = vst.msk [vmem:[%s5266_s7 + $0x418] sm:$0xff] %vm884_vm1, %v2226_v9 }
 0x4a4   :  { %v2230_v13 = vpop.f32.mrb[102].mxu1 }
 0x4a5   :  { %2469 = vst [vmem:[%s5266_s7 + $0x420] sm:$0xff] %v2230_v13  ;;  %v2232_v23 = vpop.f32.mrb[103].mxu1 }
 0x4a6   :  { %2470 = vst.msk [vmem:[%s5266_s7 + $0x428] sm:$0xff] %vm884_vm1, %v2232_v23 }
 0x4a8   :  { %v2236_v21 = vpop.f32.mrb[104].mxu1 }
 0x4a9   :  { %2471 = vst [vmem:[%s5266_s7 + $0x430] sm:$0xff] %v2236_v21  ;;  %v2238_v25 = vpop.f32.mrb[105].mxu1 }
 0x4aa   :  { %2472 = vst.msk [vmem:[%s5266_s7 + $0x438] sm:$0xff] %vm884_vm1, %v2238_v25 }
 0x4ac   :  { %v2242_v26 = vpop.f32.mrb[106].mxu1 }
 0x4ad   :  { %2473 = vst [vmem:[%s5266_s7 + $0x440] sm:$0xff] %v2242_v26  ;;  %v2244_v11 = vpop.f32.mrb[107].mxu1 }
 0x4ae   :  { %2474 = vst.msk [vmem:[%s5266_s7 + $0x448] sm:$0xff] %vm884_vm1, %v2244_v11 }
 0x4b0   :  { %v2248_v48 = vpop.f32.mrb[108].mxu1 }
 0x4b1   :  { %2475 = vst [vmem:[%s5266_s7 + $0x450] sm:$0xff] %v2248_v48  ;;  %v2250_v32 = vpop.f32.mrb[109].mxu1 }
 0x4b2   :  { %2476 = vst.msk [vmem:[%s5266_s7 + $0x458] sm:$0xff] %vm884_vm1, %v2250_v32 }
 0x4b4   :  { %v2254_v12 = vpop.f32.mrb[110].mxu1 }
 0x4b5   :  { %2477 = vst [vmem:[%s5266_s7 + $0x460] sm:$0xff] %v2254_v12  ;;  %v2256_v44 = vpop.f32.mrb[111].mxu1 }
 0x4b6   :  { %2478 = vst.msk [vmem:[%s5266_s7 + $0x468] sm:$0xff] %vm884_vm1, %v2256_v44 }
 0x4b8   :  { %v2260_v37 = vpop.f32.mrb[112].mxu1 }
 0x4b9   :  { %2479 = vst [vmem:[%s5266_s7 + $0x470] sm:$0xff] %v2260_v37  ;;  %v2262_v53 = vpop.f32.mrb[113].mxu1 }
 0x4ba   :  { %2480 = vst.msk [vmem:[%s5266_s7 + $0x478] sm:$0xff] %vm884_vm1, %v2262_v53 }
 0x4bc   :  { %v2266_v39 = vpop.f32.mrb[114].mxu1 }
 0x4bd   :  { %2481 = vst [vmem:[%s5266_s7 + $0x480] sm:$0xff] %v2266_v39  ;;  %v2268_v41 = vpop.f32.mrb[115].mxu1 }
 0x4be   :  { %2482 = vst.msk [vmem:[%s5266_s7 + $0x488] sm:$0xff] %vm884_vm1, %v2268_v41 }
 0x4c0   :  { %v2272_v33 = vpop.f32.mrb[116].mxu1 }
 0x4c1   :  { %2483 = vst [vmem:[%s5266_s7 + $0x490] sm:$0xff] %v2272_v33  ;;  %v2274_v54 = vpop.f32.mrb[117].mxu1 }
 0x4c2   :  { %2484 = vst.msk [vmem:[%s5266_s7 + $0x498] sm:$0xff] %vm884_vm1, %v2274_v54 }
 0x4c4   :  { %v2278_v40 = vpop.f32.mrb[118].mxu1 }
 0x4c5   :  { %2485 = vst [vmem:[%s5266_s7 + $0x4a0] sm:$0xff] %v2278_v40  ;;  %v2280_v43 = vpop.f32.mrb[119].mxu1 }
 0x4c6   :  { %2486 = vst.msk [vmem:[%s5266_s7 + $0x4a8] sm:$0xff] %vm884_vm1, %v2280_v43 }
 0x4c8   :  { %v2284_v34 = vpop.f32.mrb[120].mxu1 }
 0x4c9   :  { %2487 = vst [vmem:[%s5266_s7 + $0x4b0] sm:$0xff] %v2284_v34  ;;  %v2286_v35 = vpop.f32.mrb[121].mxu1 }
 0x4ca   :  { %2488 = vst.msk [vmem:[%s5266_s7 + $0x4b8] sm:$0xff] %vm884_vm1, %v2286_v35 }
 0x4cc   :  { %v2290_v27 = vpop.f32.mrb[122].mxu1 }
 0x4cd   :  { %2489 = vst [vmem:[%s5266_s7 + $0x4c0] sm:$0xff] %v2290_v27  ;;  %v2292_v31 = vpop.f32.mrb[123].mxu1 }
 0x4ce   :  { %2490 = vst.msk [vmem:[%s5266_s7 + $0x4c8] sm:$0xff] %vm884_vm1, %v2292_v31 }
 0x4d0   :  { %v2296_v38 = vpop.f32.mrb[124].mxu1 }
 0x4d1   :  { %2491 = vst [vmem:[%s5266_s7 + $0x4d0] sm:$0xff] %v2296_v38  ;;  %v2298_v45 = vpop.f32.mrb[125].mxu1 }
 0x4d2   :  { %2492 = vst.msk [vmem:[%s5266_s7 + $0x4d8] sm:$0xff] %vm884_vm1, %v2298_v45 }
 0x4d4   :  { %v2302_v42 = vpop.f32.mrb[126].mxu1 }
 0x4d5   :  { %2493 = vst [vmem:[%s5266_s7 + $0x4e0] sm:$0xff] %v2302_v42  ;;  %v2304_v46 = vpop.f32.mrb[127].mxu1 }
 0x4d6   :  { %2494 = vst.msk [vmem:[%s5266_s7 + $0x4e8] sm:$0xff] %vm884_vm1, %v2304_v46 }
 0x4d8   :  { %v2308_v16 = vpop.f32.mrb[128].mxu1 }
 0x4d9   :  { %2495 = vst [vmem:[%s5266_s7 + $0x4f0] sm:$0xff] %v2308_v16  ;;  %v2310_v20 = vpop.f32.mrb[129].mxu1 }
 0x4da   :  { %2496 = vst.msk [vmem:[%s5266_s7 + $0x4f8] sm:$0xff] %vm884_vm1, %v2310_v20 }
 0x4dc   :  { %v2314_v14 = vpop.f32.mrb[130].mxu1 }
 0x4dd   :  { %2497 = vst [vmem:[%s5266_s7 + $0x500] sm:$0xff] %v2314_v14  ;;  %v2316_v49 = vpop.f32.mrb[131].mxu1 }
 0x4de   :  { %2498 = vst.msk [vmem:[%s5266_s7 + $0x508] sm:$0xff] %vm884_vm1, %v2316_v49 }
 0x4e0   :  { %v2320_v55 = vpop.f32.mrb[132].mxu1 }
 0x4e1   :  { %2499 = vst [vmem:[%s5266_s7 + $0x510] sm:$0xff] %v2320_v55  ;;  %v2322_v50 = vpop.f32.mrb[133].mxu1 }
 0x4e2   :  { %2500 = vst.msk [vmem:[%s5266_s7 + $0x518] sm:$0xff] %vm884_vm1, %v2322_v50 }
 0x4e4   :  { %v2326_v62 = vpop.f32.mrb[134].mxu1 }
 0x4e5   :  { %2501 = vst [vmem:[%s5266_s7 + $0x520] sm:$0xff] %v2326_v62  ;;  %v2328_v2 = vpop.f32.mrb[135].mxu1 }
 0x4e6   :  { %2502 = vst.msk [vmem:[%s5266_s7 + $0x528] sm:$0xff] %vm884_vm1, %v2328_v2 }
 0x4e8   :  { %v2332_v4 = vpop.f32.mrb[136].mxu1 }
 0x4e9   :  { %2503 = vst [vmem:[%s5266_s7 + $0x530] sm:$0xff] %v2332_v4  ;;  %v2334_v61 = vpop.f32.mrb[137].mxu1 }
 0x4ea   :  { %2504 = vst.msk [vmem:[%s5266_s7 + $0x538] sm:$0xff] %vm884_vm1, %v2334_v61 }

</bundles_post_ra>
